<compile_context>
chip_gen: v7x
topology: tpu7x:2x2x1
jax: 0.10.0
libtpu: 0.0.40
codegen_flags: <defaults>
</compile_context>

<pallas_src>
import functools

import jax
import jax.numpy as jnp
from jax import lax
from jax.experimental import pallas as pl
from jax.experimental.pallas import tpu as pltpu


# ---------------------------------------------------------------------------
# Fused kernel: conv1 + ReLU + conv2 + ReLU + flatten + linear, per batch tile.
# ---------------------------------------------------------------------------
def _pyramid_kernel(x_ref, w1_ref, b1_ref, w2_ref, b2_ref, wl_ref, bl_ref,
                    o_ref, a1_ref, *, tb, half, r_in, r1, r2, hid):
    f32 = jnp.float32

    def xin(par, start):                      # (half*tb, r_in) bf16 input rows
        return x_ref[par, start:start + half, :, :].reshape(half * tb, r_in)

    def a1in(par, start):                     # (half*tb, r1) bf16 conv1 rows
        return a1_ref[par, start:start + half, :, :].reshape(half * tb, r1)

    def mm(a, b):
        return jnp.dot(a, b, preferred_element_type=f32)

    b1 = b1_ref[...]

    # ---- conv1 (3x3, s1, p1) + ReLU, computed per output-row parity ---------
    # even output rows r = 2a  -> padded-activation rows 2a+1 -> slot [1, a]
    acc_e = mm(xin(0, 0), w1_ref[0]) + mm(xin(1, 0), w1_ref[1]) + mm(xin(0, 1), w1_ref[2])
    a1_e = jnp.maximum(acc_e + b1, 0.0).astype(a1_ref.dtype)
    a1_ref[1, 0:half, :, :] = a1_e.reshape(half, tb, r1)
    # odd output rows r = 2a+1 -> padded-activation rows 2a+2 -> slot [0, a+1]
    acc_o = mm(xin(1, 0), w1_ref[0]) + mm(xin(0, 1), w1_ref[1]) + mm(xin(1, 1), w1_ref[2])
    a1_o = jnp.maximum(acc_o + b1, 0.0).astype(a1_ref.dtype)
    a1_ref[0, 1:half + 1, :, :] = a1_o.reshape(half, tb, r1)
    # top zero-padding row (conv1 row -1), read by conv2 tap ki=0
    a1_ref[0, 0, :, :] = jnp.zeros((tb, r1), a1_ref.dtype)

    # ---- conv2 (3x3, s2, p1) + ReLU ------------------------------------------
    # output row oi reads padded conv1 rows 2oi (ki=0), 2oi+1 (ki=1), 2oi+2 (ki=2)
    acc2 = mm(a1in(0, 0), w2_ref[0]) + mm(a1in(1, 0), w2_ref[1]) + mm(a1in(0, 1), w2_ref[2])
    a2 = jnp.maximum(acc2 + b2_ref[...], 0.0).astype(wl_ref.dtype)   # (half*tb, r2)

    # ---- flatten + linear (flatten folded into the permuted wl) --------------
    acc3 = jnp.zeros((tb, hid), f32)
    for oi in range(half):
        acc3 = acc3 + mm(a2[oi * tb:(oi + 1) * tb, :], wl_ref[oi])
    o_ref[...] = (acc3 + bl_ref[...]).astype(o_ref.dtype)


# ---------------------------------------------------------------------------
# One-time weight restructuring (plain-JAX glue; folds im2col, stride-2 and the
# NHWC flatten order into the weights so the kernel does only dense matmuls).
# ---------------------------------------------------------------------------
def _prep_weights(params, C, H, W, O1, O2, HID):
    f32 = jnp.float32
    w1 = params["w1"].astype(f32)   # (O1, C, 3, 3)
    b1 = params["b1"].astype(f32)
    w2 = params["w2"].astype(f32)   # (O2, O1, 3, 3)
    b2 = params["b2"].astype(f32)
    wl = params["wl"].astype(f32)   # (HID, O2*(H//2)*(W//2)), torch NCHW flatten
    bl = params["bl"].astype(f32)

    wp = W + 2                       # padded row width (cols -1 .. W)
    wo = W // 2                      # conv2 output cols

    # conv1 row operator per vertical tap ki: (wp*C) -> (wp*O1), zero at pad cols.
    w1m = jnp.zeros((3, wp, C, wp, O1), f32)
    j = jnp.arange(W)
    for ki in range(3):
        for kj in range(3):
            blk = jnp.broadcast_to(w1[:, :, ki, kj].T, (W, C, O1))
            w1m = w1m.at[ki, j + kj, :, j + 1, :].set(blk)
    w1m = w1m.reshape(3, wp * C, wp * O1)
    b1r = jnp.zeros((wp, O1), f32).at[1:W + 1, :].set(
        jnp.broadcast_to(b1, (W, O1))).reshape(1, wp * O1)

    # conv2 (stride 2) row operator per vertical tap ki: (wp*O1) -> (wo*O2).
    w2m = jnp.zeros((3, wp, O1, wo, O2), f32)
    oj = jnp.arange(wo)
    for ki in range(3):
        for kj in range(3):
            blk = jnp.broadcast_to(w2[:, :, ki, kj].T, (wo, O1, O2))
            w2m = w2m.at[ki, 2 * oj + kj, :, oj, :].set(blk)
    w2m = w2m.reshape(3, wp * O1, wo * O2)
    b2r = jnp.tile(b2, (wo,)).reshape(1, wo * O2)

    # linear weight permuted so it consumes the kernel's (oi, oj, O2) row layout
    # directly (folds both the NHWC->NCHW transpose and wl.T).
    ho = H // 2
    wlm = wl.reshape(HID, O2, ho, wo).transpose(2, 3, 1, 0).reshape(ho, wo * O2, HID)
    blr = bl.reshape(1, HID)

    return (w1m.astype(jnp.bfloat16), b1r,
            w2m.astype(jnp.bfloat16), b2r,
            wlm.astype(jnp.bfloat16), blr)


# ---------------------------------------------------------------------------
# Fused forward over a flattened batch.
# ---------------------------------------------------------------------------
def _fused_forward(x_nchw, params, *, tb=8):
    N, C, H, W = x_nchw.shape
    O1 = params["w1"].shape[0]
    O2 = params["w2"].shape[0]
    HID = params["wl"].shape[0]
    assert H % 2 == 0 and W % 2 == 0, "pyramid CNN expects even spatial dims"

    half = H // 2
    r_in = (W + 2) * C           # 72  : one zero-padded input row
    r1 = (W + 2) * O1            # 144 : one zero-padded conv1 row
    r2 = (W // 2) * O2           # 128 : one conv2 row (lane dense)

    # Activations: NCHW -> zero-padded NHWC rows packed on lanes, split by the
    # parity of the padded row index (so every conv tap is a contiguous slice).
    x = jnp.transpose(x_nchw, (0, 2, 3, 1)).astype(jnp.float32)
    x = jnp.pad(x, ((0, 0), (1, 1), (1, 1), (0, 0)))          # (N, H+2, W+2, C)
    x = x.reshape(N, H + 2, r_in).reshape(N, half + 1, 2, r_in)
    x = jnp.transpose(x, (2, 1, 0, 3))                         # (2, half+1, N, r_in)
    n_pad = max(pl.cdiv(N, tb), 2) * tb                        # >=2 grid steps (v7x: 2 TCs)
    x = jnp.pad(x, ((0, 0), (0, 0), (0, n_pad - N), (0, 0))).astype(jnp.bfloat16)

    w1m, b1r, w2m, b2r, wlm, blr = _prep_weights(params, C, H, W, O1, O2, HID)

    kernel = functools.partial(_pyramid_kernel, tb=tb, half=half,
                               r_in=r_in, r1=r1, r2=r2, hid=HID)
    out = pl.pallas_call(
        kernel,
        out_shape=jax.ShapeDtypeStruct((n_pad, HID), jnp.float32),
        grid_spec=pltpu.PrefetchScalarGridSpec(
            num_scalar_prefetch=0,
            grid=(n_pad // tb,),
            in_specs=[
                pl.BlockSpec((2, half + 1, tb, r_in), lambda i: (0, 0, i, 0)),
                pl.BlockSpec((3, r_in, r1), lambda i: (0, 0, 0)),
                pl.BlockSpec((1, r1), lambda i: (0, 0)),
                pl.BlockSpec((3, r1, r2), lambda i: (0, 0, 0)),
                pl.BlockSpec((1, r2), lambda i: (0, 0)),
                pl.BlockSpec((half, r2, HID), lambda i: (0, 0, 0)),
                pl.BlockSpec((1, HID), lambda i: (0, 0)),
            ],
            out_specs=pl.BlockSpec((tb, HID), lambda i: (i, 0)),
            scratch_shapes=[pltpu.VMEM((2, half + 1, tb, r1), jnp.bfloat16)],
        ),
        compiler_params=pltpu.CompilerParams(
            dimension_semantics=("parallel",),
            vmem_limit_bytes=32 * 1024 * 1024,
        ),
    )(x, w1m, b1r, w2m, b2r, wlm, blr)
    return out[:N]


# ---------------------------------------------------------------------------
# CNNTorchRLWrapper.forward semantics (flatten / unflatten leading batch dims).
# ---------------------------------------------------------------------------
def cnn_torchrl_wrapper(inputs, params):
    *batch, C, H, W = inputs.shape
    x = inputs.reshape((-1, C, H, W))          # also handles len(batch) in {0, 1}
    out = _fused_forward(x, params)
    return out.reshape(tuple(batch) + (out.shape[-1],))


# ---------------------------------------------------------------------------
# Pure-JAX reference for the correctness check.
# ---------------------------------------------------------------------------
def cnn_reference(inputs, params):
    *batch, C, H, W = inputs.shape
    x = inputs.reshape((-1, C, H, W))

    def conv(x, w, b, stride, pad):
        y = lax.conv_general_dilated(
            x, w, (stride, stride), [(pad, pad), (pad, pad)],
            dimension_numbers=("NCHW", "OIHW", "NCHW"))
        return y + b[None, :, None, None]

    x1 = jnp.maximum(conv(x, params["w1"], params["b1"], 1, 1), 0.0)
    x2 = jnp.maximum(conv(x1, params["w2"], params["b2"], 2, 1), 0.0)
    f = x2.reshape(x2.shape[0], -1)
    out = f @ params["wl"].T + params["bl"]
    return out.reshape(tuple(batch) + (out.shape[-1],))


if __name__ == "__main__":
    key = jax.random.PRNGKey(0)
    ks = jax.random.split(key, 7)

    B0, B1, C, H, W = 2, 3, 4, 16, 16   # multi-dim leading batch exercises flatten/unflatten
    HID = 32

    x = jax.random.normal(ks[0], (B0, B1, C, H, W), dtype=jnp.float32)
    params = {
        "w1": 0.10 * jax.random.normal(ks[1], (8, C, 3, 3), jnp.float32),
        "b1": 0.10 * jax.random.normal(ks[2], (8,), jnp.float32),
        "w2": 0.10 * jax.random.normal(ks[3], (16, 8, 3, 3), jnp.float32),
        "b2": 0.10 * jax.random.normal(ks[4], (16,), jnp.float32),
        "wl": 0.05 * jax.random.normal(ks[5], (HID, 16 * (H // 2) * (W // 2)), jnp.float32),
        "bl": 0.05 * jax.random.normal(ks[6], (HID,), jnp.float32),
    }

    fwd = jax.jit(cnn_torchrl_wrapper)
    out = jax.block_until_ready(fwd(x, params))
    ref = cnn_reference(x, params)

    assert out.shape == (B0, B1, HID), out.shape
    max_err = float(jnp.max(jnp.abs(out - ref)))
    # bf16 MXU operands with f32 accumulation -> loosen tolerance vs the f32 reference.
    assert max_err < 5e-2, f"max abs error {max_err}"
    print("KERNEL_OK")
</pallas_src>

<mosaic_0001>
module attributes {stable_mosaic.version = 11 : i64} {
  func.func @_pyramid_kernel(%arg0: i32, %arg1: memref<2x9x8x72xbf16, #tpu.memory_space<vmem>>, %arg2: memref<3x72x144xbf16, #tpu.memory_space<vmem>>, %arg3: memref<1x144xf32, #tpu.memory_space<vmem>>, %arg4: memref<3x144x128xbf16, #tpu.memory_space<vmem>>, %arg5: memref<1x128xf32, #tpu.memory_space<vmem>>, %arg6: memref<8x128x32xbf16, #tpu.memory_space<vmem>>, %arg7: memref<1x32xf32, #tpu.memory_space<vmem>>, %arg8: memref<8x32xf32, #tpu.memory_space<vmem>>, %arg9: memref<2x9x8x144xbf16, #tpu.memory_space<vmem>>) attributes {dimension_semantics = [#tpu.dimension_semantics<parallel>], iteration_bounds = array<i64: 2>, scalar_prefetch = 0 : i64, scratch_operands = 1 : i64, tpu.core_type = #tpu.core_type<tc>, window_params = [{transform_indices = @transform_0, window_bounds = array<i64: 2, 9, 8, 72>}, {pipeline_mode = #tpu.pipeline_mode<synchronous>, transform_indices = @transform_1, window_bounds = array<i64: 3, 72, 144>}, {pipeline_mode = #tpu.pipeline_mode<synchronous>, transform_indices = @transform_2, window_bounds = array<i64: 1, 144>}, {pipeline_mode = #tpu.pipeline_mode<synchronous>, transform_indices = @transform_3, window_bounds = array<i64: 3, 144, 128>}, {pipeline_mode = #tpu.pipeline_mode<synchronous>, transform_indices = @transform_4, window_bounds = array<i64: 1, 128>}, {pipeline_mode = #tpu.pipeline_mode<synchronous>, transform_indices = @transform_5, window_bounds = array<i64: 8, 128, 32>}, {pipeline_mode = #tpu.pipeline_mode<synchronous>, transform_indices = @transform_6, window_bounds = array<i64: 1, 32>}, {transform_indices = @transform_7, window_bounds = array<i64: 8, 32>}]} {
    %c0 = arith.constant 0 : index
    %c0_0 = arith.constant 0 : index
    %0 = vector.load %arg3[%c0, %c0_0] : memref<1x144xf32, #tpu.memory_space<vmem>>, vector<1x144xf32>
    %c0_1 = arith.constant 0 : index
    %c0_2 = arith.constant 0 : index
    %c0_3 = arith.constant 0 : index
    %c0_4 = arith.constant 0 : index
    %1 = vector.load %arg1[%c0_1, %c0_2, %c0_3, %c0_4] : memref<2x9x8x72xbf16, #tpu.memory_space<vmem>>, vector<1x8x8x72xbf16>
    %2 = vector.shape_cast %1 : vector<1x8x8x72xbf16> to vector<8x8x72xbf16>
    %3 = vector.shape_cast %2 : vector<8x8x72xbf16> to vector<64x72xbf16>
    %c0_5 = arith.constant 0 : index
    %c0_6 = arith.constant 0 : index
    %c0_7 = arith.constant 0 : index
    %4 = vector.load %arg2[%c0_5, %c0_6, %c0_7] : memref<3x72x144xbf16, #tpu.memory_space<vmem>>, vector<1x72x144xbf16>
    %5 = vector.shape_cast %4 : vector<1x72x144xbf16> to vector<72x144xbf16>
    %cst = arith.constant dense<0.000000e+00> : vector<64x144xf32>
    %6 = tpu.matmul %3, %5, %cst {dimension_numbers = #tpu.dot_dimension_numbers<[1], [0], [0], [1], [0, 0, 1, 1], [], []>} : vector<64x72xbf16>, vector<72x144xbf16>, vector<64x144xf32> -> vector<64x144xf32>
    %c1 = arith.constant 1 : index
    %c0_8 = arith.constant 0 : index
    %c0_9 = arith.constant 0 : index
    %c0_10 = arith.constant 0 : index
    %7 = vector.load %arg1[%c1, %c0_8, %c0_9, %c0_10] : memref<2x9x8x72xbf16, #tpu.memory_space<vmem>>, vector<1x8x8x72xbf16>
    %8 = vector.shape_cast %7 : vector<1x8x8x72xbf16> to vector<8x8x72xbf16>
    %9 = vector.shape_cast %8 : vector<8x8x72xbf16> to vector<64x72xbf16>
    %c1_11 = arith.constant 1 : index
    %c0_12 = arith.constant 0 : index
    %c0_13 = arith.constant 0 : index
    %10 = vector.load %arg2[%c1_11, %c0_12, %c0_13] : memref<3x72x144xbf16, #tpu.memory_space<vmem>>, vector<1x72x144xbf16>
    %11 = vector.shape_cast %10 : vector<1x72x144xbf16> to vector<72x144xbf16>
    %cst_14 = arith.constant dense<0.000000e+00> : vector<64x144xf32>
    %12 = tpu.matmul %9, %11, %cst_14 {dimension_numbers = #tpu.dot_dimension_numbers<[1], [0], [0], [1], [0, 0, 1, 1], [], []>} : vector<64x72xbf16>, vector<72x144xbf16>, vector<64x144xf32> -> vector<64x144xf32>
    %13 = arith.addf %6, %12 : vector<64x144xf32>
    %c0_15 = arith.constant 0 : index
    %c1_16 = arith.constant 1 : index
    %c0_17 = arith.constant 0 : index
    %c0_18 = arith.constant 0 : index
    %14 = vector.load %arg1[%c0_15, %c1_16, %c0_17, %c0_18] : memref<2x9x8x72xbf16, #tpu.memory_space<vmem>>, vector<1x8x8x72xbf16>
    %15 = vector.shape_cast %14 : vector<1x8x8x72xbf16> to vector<8x8x72xbf16>
    %16 = vector.shape_cast %15 : vector<8x8x72xbf16> to vector<64x72xbf16>
    %c2 = arith.constant 2 : index
    %c0_19 = arith.constant 0 : index
    %c0_20 = arith.constant 0 : index
    %17 = vector.load %arg2[%c2, %c0_19, %c0_20] : memref<3x72x144xbf16, #tpu.memory_space<vmem>>, vector<1x72x144xbf16>
    %18 = vector.shape_cast %17 : vector<1x72x144xbf16> to vector<72x144xbf16>
    %cst_21 = arith.constant dense<0.000000e+00> : vector<64x144xf32>
    %19 = tpu.matmul %16, %18, %cst_21 {dimension_numbers = #tpu.dot_dimension_numbers<[1], [0], [0], [1], [0, 0, 1, 1], [], []>} : vector<64x72xbf16>, vector<72x144xbf16>, vector<64x144xf32> -> vector<64x144xf32>
    %20 = arith.addf %13, %19 : vector<64x144xf32>
    %21 = vector.broadcast %0 : vector<1x144xf32> to vector<64x144xf32>
    %22 = arith.addf %20, %21 : vector<64x144xf32>
    %cst_22 = arith.constant 0.000000e+00 : f32
    %23 = vector.broadcast %cst_22 : f32 to vector<64x144xf32>
    %24 = arith.maximumf %22, %23 : vector<64x144xf32>
    %25 = arith.truncf %24 : vector<64x144xf32> to vector<64x144xbf16>
    %26 = vector.shape_cast %25 : vector<64x144xbf16> to vector<8x8x144xbf16>
    %c1_23 = arith.constant 1 : index
    %c0_24 = arith.constant 0 : index
    %c0_25 = arith.constant 0 : index
    %c0_26 = arith.constant 0 : index
    %27 = vector.load %arg9[%c1_23, %c0_24, %c0_25, %c0_26] : memref<2x9x8x144xbf16, #tpu.memory_space<vmem>>, vector<1x8x8x144xbf16>
    %28 = vector.shape_cast %27 : vector<1x8x8x144xbf16> to vector<8x8x144xbf16>
    %29 = vector.shape_cast %26 : vector<8x8x144xbf16> to vector<1x8x8x144xbf16>
    tpu.vector_store %arg9[%c1_23, %c0_24, %c0_25, %c0_26], %29 {strides = array<i32>} : memref<2x9x8x144xbf16, #tpu.memory_space<vmem>>, vector<1x8x8x144xbf16>,
    %c1_27 = arith.constant 1 : index
    %c0_28 = arith.constant 0 : index
    %c0_29 = arith.constant 0 : index
    %c0_30 = arith.constant 0 : index
    %30 = vector.load %arg1[%c1_27, %c0_28, %c0_29, %c0_30] : memref<2x9x8x72xbf16, #tpu.memory_space<vmem>>, vector<1x8x8x72xbf16>
    %31 = vector.shape_cast %30 : vector<1x8x8x72xbf16> to vector<8x8x72xbf16>
    %32 = vector.shape_cast %31 : vector<8x8x72xbf16> to vector<64x72xbf16>
    %c0_31 = arith.constant 0 : index
    %c0_32 = arith.constant 0 : index
    %c0_33 = arith.constant 0 : index
    %33 = vector.load %arg2[%c0_31, %c0_32, %c0_33] : memref<3x72x144xbf16, #tpu.memory_space<vmem>>, vector<1x72x144xbf16>
    %34 = vector.shape_cast %33 : vector<1x72x144xbf16> to vector<72x144xbf16>
    %cst_34 = arith.constant dense<0.000000e+00> : vector<64x144xf32>
    %35 = tpu.matmul %32, %34, %cst_34 {dimension_numbers = #tpu.dot_dimension_numbers<[1], [0], [0], [1], [0, 0, 1, 1], [], []>} : vector<64x72xbf16>, vector<72x144xbf16>, vector<64x144xf32> -> vector<64x144xf32>
    %c0_35 = arith.constant 0 : index
    %c1_36 = arith.constant 1 : index
    %c0_37 = arith.constant 0 : index
    %c0_38 = arith.constant 0 : index
    %36 = vector.load %arg1[%c0_35, %c1_36, %c0_37, %c0_38] : memref<2x9x8x72xbf16, #tpu.memory_space<vmem>>, vector<1x8x8x72xbf16>
    %37 = vector.shape_cast %36 : vector<1x8x8x72xbf16> to vector<8x8x72xbf16>
    %38 = vector.shape_cast %37 : vector<8x8x72xbf16> to vector<64x72xbf16>
    %c1_39 = arith.constant 1 : index
    %c0_40 = arith.constant 0 : index
    %c0_41 = arith.constant 0 : index
    %39 = vector.load %arg2[%c1_39, %c0_40, %c0_41] : memref<3x72x144xbf16, #tpu.memory_space<vmem>>, vector<1x72x144xbf16>
    %40 = vector.shape_cast %39 : vector<1x72x144xbf16> to vector<72x144xbf16>
    %cst_42 = arith.constant dense<0.000000e+00> : vector<64x144xf32>
    %41 = tpu.matmul %38, %40, %cst_42 {dimension_numbers = #tpu.dot_dimension_numbers<[1], [0], [0], [1], [0, 0, 1, 1], [], []>} : vector<64x72xbf16>, vector<72x144xbf16>, vector<64x144xf32> -> vector<64x144xf32>
    %42 = arith.addf %35, %41 : vector<64x144xf32>
    %c1_43 = arith.constant 1 : index
    %c1_44 = arith.constant 1 : index
    %c0_45 = arith.constant 0 : index
    %c0_46 = arith.constant 0 : index
    %43 = vector.load %arg1[%c1_43, %c1_44, %c0_45, %c0_46] : memref<2x9x8x72xbf16, #tpu.memory_space<vmem>>, vector<1x8x8x72xbf16>
    %44 = vector.shape_cast %43 : vector<1x8x8x72xbf16> to vector<8x8x72xbf16>
    %45 = vector.shape_cast %44 : vector<8x8x72xbf16> to vector<64x72xbf16>
    %c2_47 = arith.constant 2 : index
    %c0_48 = arith.constant 0 : index
    %c0_49 = arith.constant 0 : index
    %46 = vector.load %arg2[%c2_47, %c0_48, %c0_49] : memref<3x72x144xbf16, #tpu.memory_space<vmem>>, vector<1x72x144xbf16>
    %47 = vector.shape_cast %46 : vector<1x72x144xbf16> to vector<72x144xbf16>
    %cst_50 = arith.constant dense<0.000000e+00> : vector<64x144xf32>
    %48 = tpu.matmul %45, %47, %cst_50 {dimension_numbers = #tpu.dot_dimension_numbers<[1], [0], [0], [1], [0, 0, 1, 1], [], []>} : vector<64x72xbf16>, vector<72x144xbf16>, vector<64x144xf32> -> vector<64x144xf32>
    %49 = arith.addf %42, %48 : vector<64x144xf32>
    %50 = vector.broadcast %0 : vector<1x144xf32> to vector<64x144xf32>
    %51 = arith.addf %49, %50 : vector<64x144xf32>
    %cst_51 = arith.constant 0.000000e+00 : f32
    %52 = vector.broadcast %cst_51 : f32 to vector<64x144xf32>
    %53 = arith.maximumf %51, %52 : vector<64x144xf32>
    %54 = arith.truncf %53 : vector<64x144xf32> to vector<64x144xbf16>
    %55 = vector.shape_cast %54 : vector<64x144xbf16> to vector<8x8x144xbf16>
    %c0_52 = arith.constant 0 : index
    %c1_53 = arith.constant 1 : index
    %c0_54 = arith.constant 0 : index
    %c0_55 = arith.constant 0 : index
    %56 = vector.load %arg9[%c0_52, %c1_53, %c0_54, %c0_55] : memref<2x9x8x144xbf16, #tpu.memory_space<vmem>>, vector<1x8x8x144xbf16>
    %57 = vector.shape_cast %56 : vector<1x8x8x144xbf16> to vector<8x8x144xbf16>
    %58 = vector.shape_cast %55 : vector<8x8x144xbf16> to vector<1x8x8x144xbf16>
    tpu.vector_store %arg9[%c0_52, %c1_53, %c0_54, %c0_55], %58 {strides = array<i32>} : memref<2x9x8x144xbf16, #tpu.memory_space<vmem>>, vector<1x8x8x144xbf16>,
    %cst_56 = arith.constant 0.000000e+00 : bf16
    %59 = vector.broadcast %cst_56 : bf16 to vector<8x144xbf16>
    %c0_57 = arith.constant 0 : index
    %c0_58 = arith.constant 0 : index
    %c0_59 = arith.constant 0 : index
    %c0_60 = arith.constant 0 : index
    %60 = vector.load %arg9[%c0_57, %c0_58, %c0_59, %c0_60] : memref<2x9x8x144xbf16, #tpu.memory_space<vmem>>, vector<1x1x8x144xbf16>
    %61 = vector.shape_cast %60 : vector<1x1x8x144xbf16> to vector<8x144xbf16>
    %62 = vector.shape_cast %59 : vector<8x144xbf16> to vector<1x1x8x144xbf16>
    tpu.vector_store %arg9[%c0_57, %c0_58, %c0_59, %c0_60], %62 {strides = array<i32>} : memref<2x9x8x144xbf16, #tpu.memory_space<vmem>>, vector<1x1x8x144xbf16>,
    %c0_61 = arith.constant 0 : index
    %c0_62 = arith.constant 0 : index
    %c0_63 = arith.constant 0 : index
    %c0_64 = arith.constant 0 : index
    %63 = vector.load %arg9[%c0_61, %c0_62, %c0_63, %c0_64] : memref<2x9x8x144xbf16, #tpu.memory_space<vmem>>, vector<1x8x8x144xbf16>
    %64 = vector.shape_cast %63 : vector<1x8x8x144xbf16> to vector<8x8x144xbf16>
    %65 = vector.shape_cast %64 : vector<8x8x144xbf16> to vector<64x144xbf16>
    %c0_65 = arith.constant 0 : index
    %c0_66 = arith.constant 0 : index
    %c0_67 = arith.constant 0 : index
    %66 = vector.load %arg4[%c0_65, %c0_66, %c0_67] : memref<3x144x128xbf16, #tpu.memory_space<vmem>>, vector<1x144x128xbf16>
    %67 = vector.shape_cast %66 : vector<1x144x128xbf16> to vector<144x128xbf16>
    %cst_68 = arith.constant dense<0.000000e+00> : vector<64x128xf32>
    %68 = tpu.matmul %65, %67, %cst_68 {dimension_numbers = #tpu.dot_dimension_numbers<[1], [0], [0], [1], [0, 0, 1, 1], [], []>} : vector<64x144xbf16>, vector<144x128xbf16>, vector<64x128xf32> -> vector<64x128xf32>
    %c1_69 = arith.constant 1 : index
    %c0_70 = arith.constant 0 : index
    %c0_71 = arith.constant 0 : index
    %c0_72 = arith.constant 0 : index
    %69 = vector.load %arg9[%c1_69, %c0_70, %c0_71, %c0_72] : memref<2x9x8x144xbf16, #tpu.memory_space<vmem>>, vector<1x8x8x144xbf16>
    %70 = vector.shape_cast %69 : vector<1x8x8x144xbf16> to vector<8x8x144xbf16>
    %71 = vector.shape_cast %70 : vector<8x8x144xbf16> to vector<64x144xbf16>
    %c1_73 = arith.constant 1 : index
    %c0_74 = arith.constant 0 : index
    %c0_75 = arith.constant 0 : index
    %72 = vector.load %arg4[%c1_73, %c0_74, %c0_75] : memref<3x144x128xbf16, #tpu.memory_space<vmem>>, vector<1x144x128xbf16>
    %73 = vector.shape_cast %72 : vector<1x144x128xbf16> to vector<144x128xbf16>
    %cst_76 = arith.constant dense<0.000000e+00> : vector<64x128xf32>
    %74 = tpu.matmul %71, %73, %cst_76 {dimension_numbers = #tpu.dot_dimension_numbers<[1], [0], [0], [1], [0, 0, 1, 1], [], []>} : vector<64x144xbf16>, vector<144x128xbf16>, vector<64x128xf32> -> vector<64x128xf32>
    %75 = arith.addf %68, %74 : vector<64x128xf32>
    %c0_77 = arith.constant 0 : index
    %c1_78 = arith.constant 1 : index
    %c0_79 = arith.constant 0 : index
    %c0_80 = arith.constant 0 : index
    %76 = vector.load %arg9[%c0_77, %c1_78, %c0_79, %c0_80] : memref<2x9x8x144xbf16, #tpu.memory_space<vmem>>, vector<1x8x8x144xbf16>
    %77 = vector.shape_cast %76 : vector<1x8x8x144xbf16> to vector<8x8x144xbf16>
    %78 = vector.shape_cast %77 : vector<8x8x144xbf16> to vector<64x144xbf16>
    %c2_81 = arith.constant 2 : index
    %c0_82 = arith.constant 0 : index
    %c0_83 = arith.constant 0 : index
    %79 = vector.load %arg4[%c2_81, %c0_82, %c0_83] : memref<3x144x128xbf16, #tpu.memory_space<vmem>>, vector<1x144x128xbf16>
    %80 = vector.shape_cast %79 : vector<1x144x128xbf16> to vector<144x128xbf16>
    %cst_84 = arith.constant dense<0.000000e+00> : vector<64x128xf32>
    %81 = tpu.matmul %78, %80, %cst_84 {dimension_numbers = #tpu.dot_dimension_numbers<[1], [0], [0], [1], [0, 0, 1, 1], [], []>} : vector<64x144xbf16>, vector<144x128xbf16>, vector<64x128xf32> -> vector<64x128xf32>
    %82 = arith.addf %75, %81 : vector<64x128xf32>
    %c0_85 = arith.constant 0 : index
    %c0_86 = arith.constant 0 : index
    %83 = vector.load %arg5[%c0_85, %c0_86] : memref<1x128xf32, #tpu.memory_space<vmem>>, vector<1x128xf32>
    %84 = vector.broadcast %83 : vector<1x128xf32> to vector<64x128xf32>
    %85 = arith.addf %82, %84 : vector<64x128xf32>
    %cst_87 = arith.constant 0.000000e+00 : f32
    %86 = vector.broadcast %cst_87 : f32 to vector<64x128xf32>
    %87 = arith.maximumf %85, %86 : vector<64x128xf32>
    %88 = arith.truncf %87 : vector<64x128xf32> to vector<64x128xbf16>
    %cst_88 = arith.constant 0.000000e+00 : f32
    %89 = vector.broadcast %cst_88 : f32 to vector<8x32xf32>
    %90 = vector.extract_strided_slice %88 {offsets = [0, 0], sizes = [8, 128], strides = [1, 1]} : vector<64x128xbf16> to vector<8x128xbf16>
    %c0_89 = arith.constant 0 : index
    %c0_90 = arith.constant 0 : index
    %c0_91 = arith.constant 0 : index
    %91 = vector.load %arg6[%c0_89, %c0_90, %c0_91] : memref<8x128x32xbf16, #tpu.memory_space<vmem>>, vector<1x128x32xbf16>
    %92 = vector.shape_cast %91 : vector<1x128x32xbf16> to vector<128x32xbf16>
    %cst_92 = arith.constant dense<0.000000e+00> : vector<8x32xf32>
    %93 = tpu.matmul %90, %92, %cst_92 {dimension_numbers = #tpu.dot_dimension_numbers<[1], [0], [0], [1], [0, 0, 1, 1], [], []>} : vector<8x128xbf16>, vector<128x32xbf16>, vector<8x32xf32> -> vector<8x32xf32>
    %94 = arith.addf %89, %93 : vector<8x32xf32>
    %95 = vector.extract_strided_slice %88 {offsets = [8, 0], sizes = [8, 128], strides = [1, 1]} : vector<64x128xbf16> to vector<8x128xbf16>
    %c1_93 = arith.constant 1 : index
    %c0_94 = arith.constant 0 : index
    %c0_95 = arith.constant 0 : index
    %96 = vector.load %arg6[%c1_93, %c0_94, %c0_95] : memref<8x128x32xbf16, #tpu.memory_space<vmem>>, vector<1x128x32xbf16>
    %97 = vector.shape_cast %96 : vector<1x128x32xbf16> to vector<128x32xbf16>
    %cst_96 = arith.constant dense<0.000000e+00> : vector<8x32xf32>
    %98 = tpu.matmul %95, %97, %cst_96 {dimension_numbers = #tpu.dot_dimension_numbers<[1], [0], [0], [1], [0, 0, 1, 1], [], []>} : vector<8x128xbf16>, vector<128x32xbf16>, vector<8x32xf32> -> vector<8x32xf32>
    %99 = arith.addf %94, %98 : vector<8x32xf32>
    %100 = vector.extract_strided_slice %88 {offsets = [16, 0], sizes = [8, 128], strides = [1, 1]} : vector<64x128xbf16> to vector<8x128xbf16>
    %c2_97 = arith.constant 2 : index
    %c0_98 = arith.constant 0 : index
    %c0_99 = arith.constant 0 : index
    %101 = vector.load %arg6[%c2_97, %c0_98, %c0_99] : memref<8x128x32xbf16, #tpu.memory_space<vmem>>, vector<1x128x32xbf16>
    %102 = vector.shape_cast %101 : vector<1x128x32xbf16> to vector<128x32xbf16>
    %cst_100 = arith.constant dense<0.000000e+00> : vector<8x32xf32>
    %103 = tpu.matmul %100, %102, %cst_100 {dimension_numbers = #tpu.dot_dimension_numbers<[1], [0], [0], [1], [0, 0, 1, 1], [], []>} : vector<8x128xbf16>, vector<128x32xbf16>, vector<8x32xf32> -> vector<8x32xf32>
    %104 = arith.addf %99, %103 : vector<8x32xf32>
    %105 = vector.extract_strided_slice %88 {offsets = [24, 0], sizes = [8, 128], strides = [1, 1]} : vector<64x128xbf16> to vector<8x128xbf16>
    %c3 = arith.constant 3 : index
    %c0_101 = arith.constant 0 : index
    %c0_102 = arith.constant 0 : index
    %106 = vector.load %arg6[%c3, %c0_101, %c0_102] : memref<8x128x32xbf16, #tpu.memory_space<vmem>>, vector<1x128x32xbf16>
    %107 = vector.shape_cast %106 : vector<1x128x32xbf16> to vector<128x32xbf16>
    %cst_103 = arith.constant dense<0.000000e+00> : vector<8x32xf32>
    %108 = tpu.matmul %105, %107, %cst_103 {dimension_numbers = #tpu.dot_dimension_numbers<[1], [0], [0], [1], [0, 0, 1, 1], [], []>} : vector<8x128xbf16>, vector<128x32xbf16>, vector<8x32xf32> -> vector<8x32xf32>
    %109 = arith.addf %104, %108 : vector<8x32xf32>
    %110 = vector.extract_strided_slice %88 {offsets = [32, 0], sizes = [8, 128], strides = [1, 1]} : vector<64x128xbf16> to vector<8x128xbf16>
    %c4 = arith.constant 4 : index
    %c0_104 = arith.constant 0 : index
    %c0_105 = arith.constant 0 : index
    %111 = vector.load %arg6[%c4, %c0_104, %c0_105] : memref<8x128x32xbf16, #tpu.memory_space<vmem>>, vector<1x128x32xbf16>
    %112 = vector.shape_cast %111 : vector<1x128x32xbf16> to vector<128x32xbf16>
    %cst_106 = arith.constant dense<0.000000e+00> : vector<8x32xf32>
    %113 = tpu.matmul %110, %112, %cst_106 {dimension_numbers = #tpu.dot_dimension_numbers<[1], [0], [0], [1], [0, 0, 1, 1], [], []>} : vector<8x128xbf16>, vector<128x32xbf16>, vector<8x32xf32> -> vector<8x32xf32>
    %114 = arith.addf %109, %113 : vector<8x32xf32>
    %115 = vector.extract_strided_slice %88 {offsets = [40, 0], sizes = [8, 128], strides = [1, 1]} : vector<64x128xbf16> to vector<8x128xbf16>
    %c5 = arith.constant 5 : index
    %c0_107 = arith.constant 0 : index
    %c0_108 = arith.constant 0 : index
    %116 = vector.load %arg6[%c5, %c0_107, %c0_108] : memref<8x128x32xbf16, #tpu.memory_space<vmem>>, vector<1x128x32xbf16>
    %117 = vector.shape_cast %116 : vector<1x128x32xbf16> to vector<128x32xbf16>
    %cst_109 = arith.constant dense<0.000000e+00> : vector<8x32xf32>
    %118 = tpu.matmul %115, %117, %cst_109 {dimension_numbers = #tpu.dot_dimension_numbers<[1], [0], [0], [1], [0, 0, 1, 1], [], []>} : vector<8x128xbf16>, vector<128x32xbf16>, vector<8x32xf32> -> vector<8x32xf32>
    %119 = arith.addf %114, %118 : vector<8x32xf32>
    %120 = vector.extract_strided_slice %88 {offsets = [48, 0], sizes = [8, 128], strides = [1, 1]} : vector<64x128xbf16> to vector<8x128xbf16>
    %c6 = arith.constant 6 : index
    %c0_110 = arith.constant 0 : index
    %c0_111 = arith.constant 0 : index
    %121 = vector.load %arg6[%c6, %c0_110, %c0_111] : memref<8x128x32xbf16, #tpu.memory_space<vmem>>, vector<1x128x32xbf16>
    %122 = vector.shape_cast %121 : vector<1x128x32xbf16> to vector<128x32xbf16>
    %cst_112 = arith.constant dense<0.000000e+00> : vector<8x32xf32>
    %123 = tpu.matmul %120, %122, %cst_112 {dimension_numbers = #tpu.dot_dimension_numbers<[1], [0], [0], [1], [0, 0, 1, 1], [], []>} : vector<8x128xbf16>, vector<128x32xbf16>, vector<8x32xf32> -> vector<8x32xf32>
    %124 = arith.addf %119, %123 : vector<8x32xf32>
    %125 = vector.extract_strided_slice %88 {offsets = [56, 0], sizes = [8, 128], strides = [1, 1]} : vector<64x128xbf16> to vector<8x128xbf16>
    %c7 = arith.constant 7 : index
    %c0_113 = arith.constant 0 : index
    %c0_114 = arith.constant 0 : index
    %126 = vector.load %arg6[%c7, %c0_113, %c0_114] : memref<8x128x32xbf16, #tpu.memory_space<vmem>>, vector<1x128x32xbf16>
    %127 = vector.shape_cast %126 : vector<1x128x32xbf16> to vector<128x32xbf16>
    %cst_115 = arith.constant dense<0.000000e+00> : vector<8x32xf32>
    %128 = tpu.matmul %125, %127, %cst_115 {dimension_numbers = #tpu.dot_dimension_numbers<[1], [0], [0], [1], [0, 0, 1, 1], [], []>} : vector<8x128xbf16>, vector<128x32xbf16>, vector<8x32xf32> -> vector<8x32xf32>
    %129 = arith.addf %124, %128 : vector<8x32xf32>
    %c0_116 = arith.constant 0 : index
    %c0_117 = arith.constant 0 : index
    %130 = vector.load %arg7[%c0_116, %c0_117] : memref<1x32xf32, #tpu.memory_space<vmem>>, vector<1x32xf32>
    %131 = vector.broadcast %130 : vector<1x32xf32> to vector<8x32xf32>
    %132 = arith.addf %129, %131 : vector<8x32xf32>
    %c0_118 = arith.constant 0 : index
    %c0_119 = arith.constant 0 : index
    %133 = vector.load %arg8[%c0_118, %c0_119] : memref<8x32xf32, #tpu.memory_space<vmem>>, vector<8x32xf32>
    tpu.vector_store %arg8[%c0_118, %c0_119], %132 {strides = array<i32>} : memref<8x32xf32, #tpu.memory_space<vmem>>, vector<8x32xf32>,
    return
  }
  func.func @transform_0(%arg0: i32) -> (i32, i32, i32, i32) {
    %c0_i32 = arith.constant 0 : i32
    %c0_i32_0 = arith.constant 0 : i32
    %c0_i32_1 = arith.constant 0 : i32
    %c0_i32_2 = arith.constant 0 : i32
    return %c0_i32, %c0_i32_0, %arg0, %c0_i32_1 : i32, i32, i32, i32
  }
  func.func @transform_1(%arg0: i32) -> (i32, i32, i32) {
    %c0_i32 = arith.constant 0 : i32
    %c0_i32_0 = arith.constant 0 : i32
    %c0_i32_1 = arith.constant 0 : i32
    %c0_i32_2 = arith.constant 0 : i32
    return %c0_i32, %c0_i32_0, %c0_i32_1 : i32, i32, i32
  }
  func.func @transform_2(%arg0: i32) -> (i32, i32) {
    %c0_i32 = arith.constant 0 : i32
    %c0_i32_0 = arith.constant 0 : i32
    %c0_i32_1 = arith.constant 0 : i32
    return %c0_i32, %c0_i32_0 : i32, i32
  }
  func.func @transform_3(%arg0: i32) -> (i32, i32, i32) {
    %c0_i32 = arith.constant 0 : i32
    %c0_i32_0 = arith.constant 0 : i32
    %c0_i32_1 = arith.constant 0 : i32
    %c0_i32_2 = arith.constant 0 : i32
    return %c0_i32, %c0_i32_0, %c0_i32_1 : i32, i32, i32
  }
  func.func @transform_4(%arg0: i32) -> (i32, i32) {
    %c0_i32 = arith.constant 0 : i32
    %c0_i32_0 = arith.constant 0 : i32
    %c0_i32_1 = arith.constant 0 : i32
    return %c0_i32, %c0_i32_0 : i32, i32
  }
  func.func @transform_5(%arg0: i32) -> (i32, i32, i32) {
    %c0_i32 = arith.constant 0 : i32
    %c0_i32_0 = arith.constant 0 : i32
    %c0_i32_1 = arith.constant 0 : i32
    %c0_i32_2 = arith.constant 0 : i32
    return %c0_i32, %c0_i32_0, %c0_i32_1 : i32, i32, i32
  }
  func.func @transform_6(%arg0: i32) -> (i32, i32) {
    %c0_i32 = arith.constant 0 : i32
    %c0_i32_0 = arith.constant 0 : i32
    %c0_i32_1 = arith.constant 0 : i32
    return %c0_i32, %c0_i32_0 : i32, i32
  }
  func.func @transform_7(%arg0: i32) -> (i32, i32) {
    %c0_i32 = arith.constant 0 : i32
    %c0_i32_0 = arith.constant 0 : i32
    return %arg0, %c0_i32 : i32, i32
  }
}

</mosaic_0001>

<bundles_post_ra>
// kernel: tile.8
= control target key start
LH: loop header
LB: loop body
LE: loop exit
PB: predicated region body
PF: predicated region fallthrough
CT: control target
= control target key end

     0   :  { %s22_s0 = inlined_call_operand.vmem [shape: f32[16], index: 0, kind: input, shape index: {}]   ;;  %s23_s1 = inlined_call_operand.vmem [shape: f32[8,16], index: 1, kind: output, shape index: {}]  }
   0x1   :  { %v4_v0 = vld [vmem:[%s22_s0] ss:$0 sm:$0xff] }
   0x2   :  { %5 = vst [vmem:[%s23_s1] sm:$0xff] %v4_v0 }

// kernel: tile.9
= control target key start
LH: loop header
LB: loop body
LE: loop exit
PB: predicated region body
PF: predicated region fallthrough
CT: control target
= control target key end

     0   :  { %s67_s10 = smov 112   ;;  %s68_s11 = smov 80   ;;  %vm3_vm0 = vcmask 130048   ;;  %vm9_vm1 = vcmask 1048448   ;;  %vm15_vm2 = vcmask 917248   ;;  %vm21_vm3 = vcmask 786048   ;;  %s111_s0 = inlined_call_operand.vmem [shape: f32[8,16], index: 0, kind: input, shape index: {}]   ;;  %s112_s1 = inlined_call_operand.vmem [shape: f32[1,128], index: 1, kind: output, shape index: {}]  }
   0x1   :  { %v53_v0 = vld [vmem:[%s111_s0 + $0x7] sm:$0x1]   ;;  %v55_v1 = vld [vmem:[%s111_s0 + $0x5] sm:$0x1]   ;;  %v54_v2 = vld [vmem:[%s111_s0 + $0x6] sm:$0x1]  }
   0x2   :  { %7 = vrot.lane.b32.xlu0 %v53_v0, %s67_s10  ;;  %19 = vrot.lane.b32.xlu1 %v55_v1, %s68_s11  ;;  %v56_v3 = vld [vmem:[%s111_s0 + $0x4] sm:$0x1]   ;;  %v2_v4 = vld [vmem:[%s111_s0] sm:$0x1]   ;;  %s69_s18 = smov 96   ;;  %s70_s19 = smov 64  }
   0x3   :  { %4 = vst.msk [vmem:[#allocation0] sm:$0x1] %vm3_vm0, %v2_v4   ;;  %v57_v5 = vld [vmem:[%s111_s0 + $0x3] sm:$0x1]   ;;  %v58_v6 = vld [vmem:[%s111_s0 + $0x2] sm:$0x1]  }
   0x4   :  { %s71_s24 = smov 48   ;;  %s72_s25 = smov 32   ;;  %v59_v7 = vld [vmem:[%s111_s0 + $0x1] sm:$0x1]   ;;  %vm27_vm4 = vcmask 654848   ;;  %vm33_vm5 = vcmask 523648  }
   0x5   :  { %s73_s0 = smov 16   ;;  %vm39_vm6 = vcmask 392448   ;;  %vm45_vm7 = vcmask 261248  }
   0x6   :  { %13 = vrot.lane.b32.xlu0 %v54_v2, %s69_s18  ;;  %25 = vrot.lane.b32.xlu1 %v56_v3, %s70_s19 }
   0xa   :  { %31 = vrot.lane.b32.xlu0 %v57_v5, %s71_s24  ;;  %37 = vrot.lane.b32.xlu1 %v58_v6, %s72_s25 }
   0xe   :  { %43 = vrot.lane.b32.xlu0 %v59_v7, %s73_s0 }
  0x74   :  { %v8_v8 = vpop.permute.xlu0 %7   ;;  %v20_v9 = vpop.permute.xlu1 %19  }
  0x75   :  { %10 = vst.msk [vmem:[#allocation0] sm:$0x1] %vm9_vm1, %v8_v8  }
  0x78   :  { %v14_v10 = vpop.permute.xlu0 %13   ;;  %v26_v11 = vpop.permute.xlu1 %25  }
  0x79   :  { %16 = vst.msk [vmem:[#allocation0] sm:$0x1] %vm15_vm2, %v14_v10  }
  0x7a   :  { %22 = vst.msk [vmem:[#allocation0] sm:$0x1] %vm21_vm3, %v20_v9  }
  0x7b   :  { %28 = vst.msk [vmem:[#allocation0] sm:$0x1] %vm27_vm4, %v26_v11  }
  0x7c   :  { %v32_v12 = vpop.permute.xlu0 %31   ;;  %v38_v13 = vpop.permute.xlu1 %37  }
  0x7d   :  { %34 = vst.msk [vmem:[#allocation0] sm:$0x1] %vm33_vm5, %v32_v12  }
  0x7e   :  { %40 = vst.msk [vmem:[#allocation0] sm:$0x1] %vm39_vm6, %v38_v13  }
  0x80   :  { %v44_v14 = vpop.permute.xlu0 %43  }
  0x81   :  { %46 = vst.msk [vmem:[#allocation0] sm:$0x1] %vm45_vm7, %v44_v14  }
  0x88   :  { %v50_v15 = vld [vmem:[#allocation0] sm:$0x1] }
  0x89   :  { %52 = vst [vmem:[%s112_s1] sm:$0x1] %v50_v15 }

// kernel: cnn_torchrl_wrapper.1
= control target key start
LH: loop header
LB: loop body
LE: loop exit
PB: predicated region body
PF: predicated region fallthrough
CT: control target
= control target key end

     0   :  { %s4280_s24 = smov 0   ;;  %s4282_s25 = smov 0   ;;  %s5062_s0 = inlined_call_operand.vmem [shape: bf16[2,9,16,72], index: 0, kind: input, shape index: {}]   ;;  %s5063_s1 = inlined_call_operand.vmem [shape: bf16[3,72,144], index: 1, kind: input, shape index: {}]   ;;  %s5064_s2 = inlined_call_operand.vmem [shape: f32[1,144], index: 2, kind: input, shape index: {}]   ;;  %s5065_s3 = inlined_call_operand.vmem [shape: bf16[3,144,128], index: 3, kind: input, shape index: {}]   ;;  %s5066_s4 = inlined_call_operand.vmem [shape: f32[1,128], index: 4, kind: input, shape index: {}]   ;;  %s5067_s5 = inlined_call_operand.vmem [shape: bf16[8,128,32], index: 5, kind: input, shape index: {}]   ;;  %s5068_s6 = inlined_call_operand.vmem [shape: f32[1,32], index: 6, kind: input, shape index: {}]   ;;  %s5069_s7 = inlined_call_operand.vmem [shape: f32[16,32], index: 7, kind: output, shape index: {}]  }
   0x1   :  { %s4284_s26 = smov 0  }
   0x2 LB: > { %s3200_s27 = sadd.s32 4294967295, %s4235_s26   ;;  %s4297_s28 = sadd.s32 1, %s4235_s26   ;;  %s4235_s26 = sphi %s4284_s26, %s5074_s26   ;;  %s4231_s25 = sphi %s4282_s25, %s5073_s25   ;;  %s4227_s24 = sphi %s4280_s24, %s5072_s24  }
   0x3   : > { %s21_s29 = ssub.s32 %s4235_s26, %s4297_s28  ;;  %s24_s30 = sadd.s32 1, %s4231_s25 }
   0x4   : > { %p22_p0 = scmp.eq.s32.totalorder %s21_s29, 0  ;;  %p31_p1 = scmp.ne.s32.totalorder %s4231_s25, %s4227_s24 }
   0x5   : > { %p32_p2 = scmp.eq.s32.totalorder %s4235_s26, 0  ;;  %p3203_p4 = scmp.ge.s32.totalorder %s4235_s26, 2 }
   0x6   : > { %s4306_s8 = scalar_select %p22_p0, %s4231_s25, %s24_s30  }
   0x7   : > { %p33_p3 = por %p32_p2, %p31_p1  ;;  %227 = sbr.rel (%p3203_p4) target bundleno = 30 (0x1e), region = 40 }
   0xe   : > { %230 = sbr.rel (!%p33_p3) target bundleno = 30 (0x1e), region = 44  ;;  %s232_s9 = sand.u32 (%p33_p3), 1, %s4231_s25  }
   0xf   : > { %s3204_s10 = sshll.u32 (%p33_p3), %s4235_s26, 2  ;;  %s4004_s11 = smul.u32 (%p33_p3), 72, %s232_s9 }
  0x10   : > { %s4314_s14 = scalar_lea.vmem (%p33_p3), %s5062_s0, %s3204_s10 }
  0x11   : > { %v252_v0 = vld [vmem:[%s4314_s14] sm:$0xf] (%p33_p3)  ;;  %v254_v1 = vld [vmem:[%s4314_s14 + $0x8] sm:$0xf] (%p33_p3)  ;;  %v256_v2 = vld [vmem:[%s4314_s14 + $0x10] sm:$0xf] (%p33_p3) }
  0x12   : > { %v258_v3 = vld [vmem:[%s4314_s14 + $0x18] sm:$0xf] (%p33_p3)  ;;  %v260_v4 = vld [vmem:[%s4314_s14 + $0x20] sm:$0xf] (%p33_p3)  ;;  %s4321_s15 = scalar_lea.vmem (%p33_p3), [#allocation3], %s4004_s11 }
  0x13   : > { %253 = vst [vmem:[%s4321_s15] sm:$0xf] (%p33_p3), %v252_v0  ;;  %255 = vst [vmem:[%s4321_s15 + $0x4] sm:$0xf] (%p33_p3), %v254_v1  ;;  %v262_v5 = vld [vmem:[%s4314_s14 + $0x28] sm:$0xf] (%p33_p3) }
  0x14   : > { %257 = vst [vmem:[%s4321_s15 + $0x8] sm:$0xf] (%p33_p3), %v256_v2  ;;  %259 = vst [vmem:[%s4321_s15 + $0xc] sm:$0xf] (%p33_p3), %v258_v3  ;;  %v264_v6 = vld [vmem:[%s4314_s14 + $0x30] sm:$0xf] (%p33_p3) }
  0x15   : > { %261 = vst [vmem:[%s4321_s15 + $0x10] sm:$0xf] %v260_v4  ;;  %v266_v7 = vld [vmem:[%s4314_s14 + $0x38] sm:$0xf]  ;;  %263 = vst [vmem:[%s4321_s15 + $0x14] sm:$0xf] %v262_v5 }
  0x16   : > { %265 = vst [vmem:[%s4321_s15 + $0x18] sm:$0xf] %v264_v6  ;;  %267 = vst [vmem:[%s4321_s15 + $0x1c] sm:$0xf] %v266_v7  ;;  %v268_v8 = vld [vmem:[%s4314_s14 + $0x40] sm:$0xf] }
  0x17   : > { %v270_v9 = vld [vmem:[%s4314_s14 + $0x48] sm:$0xf]  ;;  %v272_v10 = vld [vmem:[%s4314_s14 + $0x50] sm:$0xf]  ;;  %269 = vst [vmem:[%s4321_s15 + $0x20] sm:$0xf] %v268_v8 }
  0x18   : > { %271 = vst [vmem:[%s4321_s15 + $0x24] sm:$0xf] %v270_v9  ;;  %273 = vst [vmem:[%s4321_s15 + $0x28] sm:$0xf] %v272_v10  ;;  %v274_v11 = vld [vmem:[%s4314_s14 + $0x58] sm:$0xf] }
  0x19   : > { %v276_v12 = vld [vmem:[%s4314_s14 + $0x60] sm:$0xf]  ;;  %v278_v13 = vld [vmem:[%s4314_s14 + $0x68] sm:$0xf]  ;;  %275 = vst [vmem:[%s4321_s15 + $0x2c] sm:$0xf] %v274_v11 }
  0x1a   : > { %277 = vst [vmem:[%s4321_s15 + $0x30] sm:$0xf] %v276_v12  ;;  %279 = vst [vmem:[%s4321_s15 + $0x34] sm:$0xf] %v278_v13  ;;  %v280_v14 = vld [vmem:[%s4314_s14 + $0x70] sm:$0xf] }
  0x1b   : > { %v282_v15 = vld [vmem:[%s4314_s14 + $0x78] sm:$0xf]  ;;  %v284_v16 = vld [vmem:[%s4314_s14 + $0x80] sm:$0xf]  ;;  %281 = vst [vmem:[%s4321_s15 + $0x38] sm:$0xf] %v280_v14 }
  0x1c   : > { %283 = vst [vmem:[%s4321_s15 + $0x3c] sm:$0xf] %v282_v15  ;;  %285 = vst [vmem:[%s4321_s15 + $0x40] sm:$0xf] %v284_v16  ;;  %v286_v17 = vld [vmem:[%s4314_s14 + $0x88] sm:$0xf] }
  0x1d   : > { %287 = vst [vmem:[%s4321_s15 + $0x44] sm:$0xf] %v286_v17 }
  0x1e PF: > { %p3205_p5 = scmp.ge.s32.totalorder %s4235_s26, 1  ;;  %p345_p6 = scmp.lt.s32.totalorder %s4235_s26, 3 }
  0x20   : > { %p346_p7 = pnand %p3205_p5, %p345_p6 }
  0x21   : > { %v4033_v18 = vld [vmem:[%s5063_s1 + $0x4c] ss:$8 sps:$4 sm:$0xff] (!%p346_p7)   ;;  %v4035_v19 = vld [vmem:[%s5063_s1 + $0x48] ss:$8 sps:$4 sm:$0xff] (!%p346_p7)   ;;  %v4237_v20 = vmov (!%p346_p7), 0   ;;  %s352_s20 = sand.u32 (!%p346_p7), 1, %s4227_s24  }
  0x22   : > { %349 = sbr.rel (%p346_p7) target bundleno = 954 (0x3ba), region = 85  ;;  %541 = vmatprep.mubr.bf16.mxu0 (!%p346_p7), %v4237_v20  ;;  %1180 = vmatprep.mubr.bf16.mxu1 (!%p346_p7), %v4237_v20  ;;  %v4036_v21 = vld [vmem:[%s5063_s1 + $0x5c] ss:$8 sps:$4 sm:$0xff] (!%p346_p7)   ;;  %v4038_v22 = vld [vmem:[%s5063_s1 + $0x58] ss:$8 sps:$4 sm:$0xff] (!%p346_p7)   ;;  %v3223_v26 = vld [vmem:[%s5063_s1 + $0x88] sm:$0xff] (!%p346_p7) }
  0x23   : > { %509 = vmatprep.subr.bf16.mxu0 (!%p346_p7), %v4033_v18  ;;  %1148 = vmatprep.subr.bf16.mxu1 (!%p346_p7), %v4033_v18  ;;  %s4005_s23 = smul.u32 (!%p346_p7), 72, %s352_s20  ;;  %v4039_v23 = vld [vmem:[%s5063_s1 + $0x6c] ss:$8 sps:$4 sm:$0xff] (!%p346_p7)   ;;  %v4041_v24 = vld [vmem:[%s5063_s1 + $0x68] ss:$8 sps:$4 sm:$0xff] (!%p346_p7)   ;;  %v3237_v28 = vcombine.high (!%p346_p7), %v3223_v26, %v3223_v26  ;;  %v3236_v29 = vcombine.low (!%p346_p7), %v3223_v26, %v3223_v26  ;;  %vm502_vm0 = vcmask (!%p346_p7), 1043456  }
  0x24   : > { %510 = vmatpush1.bf16.msra.mxu0 (!%p346_p7), %v4035_v19  ;;  %1149 = vmatpush1.bf16.msra.mxu1 (!%p346_p7), %v4035_v19  ;;  %v4042_v25 = vld [vmem:[%s5063_s1 + $0x7c] ss:$8 sps:$4 sm:$0xff] (!%p346_p7)   ;;  %v4044_v27 = vld [vmem:[%s5063_s1 + $0x78] ss:$8 sps:$4 sm:$0xff] (!%p346_p7)   ;;  %vm489_vm1 = vcmask (!%p346_p7), 588800   ;;  %v3278_v52 = vld [vmem:[%s5063_s1 + $0xd0] sm:$0xff] (!%p346_p7) }
  0x25   : > { %511 = vmatprep.subr.bf16.mxu0 (!%p346_p7), %v4036_v21  ;;  %1150 = vmatprep.subr.bf16.mxu1 (!%p346_p7), %v4036_v21  ;;  %s4374_s24 = scalar_lea.vmem (!%p346_p7), [#allocation3], %s4005_s23  ;;  %v504_v30 = vsel (!%p346_p7), %vm502_vm0, %v3236_v29, 0  ;;  %v4050_v31 = vld [vmem:[%s5063_s1 + $0x4] ss:$8 sps:$4 sm:$0xff] (!%p346_p7)   ;;  %v4048_v34 = vld [vmem:[%s5063_s1] ss:$8 sps:$4 sm:$0xff] (!%p346_p7)   ;;  %v3291_v53 = vcombine.low (!%p346_p7), %v3278_v52, %v3278_v52  ;;  %v3292_v4 = vcombine.high (!%p346_p7), %v3278_v52, %v3278_v52 }
  0x26   : > { %v4047_v32 = vld [vmem:[%s4374_s24 + $0x24] sm:$0xff] (!%p346_p7)   ;;  %v4059_v37 = vld [vmem:[%s5063_s1 + $0x24] ss:$8 sps:$4 sm:$0xff] (!%p346_p7)   ;;  %vm1021_vm2 = vcmask (!%p346_p7), 130052   ;;  %vm1800_vm4 = vcmask (!%p346_p7), 130048   ;;  %vm4239_vm5 = vmmov (!%p346_p7), 0  }
  0x27   : > { %v4051_v33 = vld [vmem:[%s4374_s24 + $0x4] sm:$0xff] (!%p346_p7)   ;;  %v4055_v38 = vld [vmem:[%s4374_s24 + $0x2c] sm:$0xff] (!%p346_p7)   ;;  %v4060_v45 = vld [vmem:[%s4374_s24 + $0x34] sm:$0xff] (!%p346_p7)   ;;  %v835_v57 = vsel (!%p346_p7), %vm502_vm0, %v3291_v53, 0  ;;  %p382_p8 = scmp.lt.s32.totalorder (!%p346_p7), %s3200_s27, 1  ;;  %vm3139_vm6 = vcmask (!%p346_p7), 261120  }
  0x28   : > { %512 = vmatpush1.bf16.msra.mxu0 (!%p346_p7), %v4038_v22  ;;  %1151 = vmatpush1.bf16.msra.mxu1 (!%p346_p7), %v4038_v22  ;;  %v4054_v35 = vld [vmem:[%s5063_s1 + $0x14] ss:$8 sps:$4 sm:$0xff] (!%p346_p7)   ;;  %v4052_v36 = vld [vmem:[%s5063_s1 + $0x10] ss:$8 sps:$4 sm:$0xff] (!%p346_p7)   ;;  %v4057_v40 = vld [vmem:[%s5063_s1 + $0x20] ss:$8 sps:$4 sm:$0xff] (!%p346_p7)  }
  0x29   : > { %513 = vmatprep.subr.bf16.mxu0 %v4039_v23  ;;  %1152 = vmatprep.subr.bf16.mxu1 %v4039_v23  ;;  %v4056_v39 = vld [vmem:[%s4374_s24 + $0xc] sm:$0xff]   ;;  %v4062_v43 = vld [vmem:[%s5063_s1 + $0x30] ss:$8 sps:$4 sm:$0xff]   ;;  %vm4578_vm3 = vmor %vm1021_vm2, %vm502_vm0  ;;  %s5076_s27 = smov (!%p382_p8, %s3200_s27), 1 }
  0x2a   : > { %v4064_v41 = vld [vmem:[%s5063_s1 + $0x34] ss:$8 sps:$4 sm:$0xff]   ;;  %v404_v42 = vld [vmem:[%s5063_s1 + $0x40] sm:$0xff]  ;;  %v4070_v55 = vld [vmem:[%s5063_s1 + $0x90] ss:$8 sps:$4 sm:$0xff]   ;;  %1656 = vst.msk [vmem:[#allocation2] sm:$0xff] %vm4578_vm3, %v4237_v20 }
  0x2b   : > { %v3256_v44 = vcombine.high %v404_v42, %v404_v42  ;;  %v3255_v46 = vcombine.low %v404_v42, %v404_v42  ;;  %v4061_v47 = vld [vmem:[%s4374_s24 + $0x14] sm:$0xff]   ;;  %v4072_v48 = vld [vmem:[%s5063_s1 + $0x94] ss:$8 sps:$4 sm:$0xff]   ;;  %s3206_s10 = sshll.u32 %s5076_s27, 3 }
  0x2c   : > { %514 = vmatpush1.bf16.msra.mxu0 %v4041_v24  ;;  %1153 = vmatpush1.bf16.msra.mxu1 %v4041_v24  ;;  %v4065_v50 = vld [vmem:[%s4374_s24 + $0x3c] sm:$0xff]   ;;  %v4073_v56 = vld [vmem:[%s4374_s24 + $0x24] sm:$0xff]   ;;  %v4078_v62 = vld [vmem:[%s4374_s24 + $0x2c] sm:$0xff]   ;;  %s385_s15 = scalar_lea.vmem %s5069_s7, %s3206_s10 }
  0x2d   : > { %515 = vmatprep.subr.bf16.mxu0 %v4042_v25  ;;  %1154 = vmatprep.subr.bf16.mxu1 %v4042_v25  ;;  %v660_v49 = vsel %vm502_vm0, %v3255_v46, 0  ;;  %v4066_v51 = vld [vmem:[%s4374_s24 + $0x1c] sm:$0xff]   ;;  %v4074_v59 = vld [vmem:[%s5063_s1 + $0xa0] ss:$8 sps:$4 sm:$0xff]  }
  0x2e   : > { %v4069_v54 = vld [vmem:[%s4374_s24] sm:$0xff]   ;;  %v4076_v58 = vld [vmem:[%s5063_s1 + $0xa4] ss:$8 sps:$4 sm:$0xff]   ;;  %v4084_v1 = vld [vmem:[%s5063_s1 + $0xc0] ss:$8 sps:$4 sm:$0xff]  }
  0x2f   : > { %v4081_v60 = vld [vmem:[%s5063_s1 + $0xb4] ss:$8 sps:$4 sm:$0xff]   ;;  %v4079_v63 = vld [vmem:[%s5063_s1 + $0xb0] ss:$8 sps:$4 sm:$0xff]   ;;  %v4086_v0 = vld [vmem:[%s5063_s1 + $0xc4] ss:$8 sps:$4 sm:$0xff]  }
  0x30   : > { %516 = vmatpush1.bf16.msra.mxu0 %v4044_v27  ;;  %1155 = vmatpush1.bf16.msra.mxu1 %v4044_v27  ;;  %v4077_v61 = vld [vmem:[%s4374_s24 + $0x8] sm:$0xff]   ;;  %v4082_v2 = vld [vmem:[%s4374_s24 + $0x10] sm:$0xff]   ;;  %v4087_v5 = vld [vmem:[%s4374_s24 + $0x18] sm:$0xff]  }
  0x31   : > { %3238 = vmatprep.subr.msk.bf16.mxu0 %vm502_vm0, %v3237_v28  ;;  %3345 = vmatprep.subr.msk.bf16.mxu1 %vm502_vm0, %v3237_v28  ;;  %v4083_v3 = vld [vmem:[%s4374_s24 + $0x34] sm:$0xff]   ;;  %v4088_v6 = vld [vmem:[%s4374_s24 + $0x3c] sm:$0xff]   ;;  %v4091_v7 = vld [vmem:[%s4374_s24 + $0x4] sm:$0xff]  }
  0x32   : > { %v4092_v8 = vld [vmem:[%s4374_s24 + $0x28] sm:$0xff]   ;;  %v4100_v10 = vld [vmem:[%s5065_s3 + $0x48] sm:$0xff]   ;;  %v4102_v12 = vld [vmem:[%s5065_s3 + $0x50] sm:$0xff]  }
  0x33   : > { %v4099_v9 = vld [vmem:[%s5065_s3] sm:$0xff]   ;;  %v4101_v11 = vld [vmem:[%s5065_s3 + $0x8] sm:$0xff]   ;;  %v4103_v15 = vld [vmem:[%s5065_s3 + $0x10] sm:$0xff]  }
  0x34   : > { %518 = vmatpush1.bf16.msra.mxu0 %v504_v30  ;;  %1157 = vmatpush1.bf16.msra.mxu1 %v504_v30  ;;  %v4093_v13 = vld [vmem:[%s4374_s24 + $0xc] sm:$0xff]   ;;  %v4095_v19 = vld [vmem:[%s4374_s24 + $0x14] sm:$0xff]   ;;  %v4097_v22 = vld [vmem:[%s4374_s24 + $0x1c] sm:$0xff]  }
  0x35   : > { %665 = vmatprep.subr.bf16.mxu0 %v4050_v31  ;;  %1304 = vmatprep.subr.bf16.mxu1 %v4050_v31  ;;  %v4094_v14 = vld [vmem:[%s4374_s24 + $0x30] sm:$0xff]   ;;  %v4104_v16 = vld [vmem:[%s5065_s3 + $0x58] sm:$0xff]   ;;  %v4096_v21 = vld [vmem:[%s4374_s24 + $0x38] sm:$0xff]  }
  0x36   : > { %v4105_v17 = vld [vmem:[%s5065_s3 + $0x18] sm:$0xff]   ;;  %v4106_v18 = vld [vmem:[%s5065_s3 + $0x60] sm:$0xff]   ;;  %v4108_v25 = vld [vmem:[%s5065_s3 + $0x68] sm:$0xff]  }
  0x37   : > { %3239 = vmatmul.mubr.msk.bf16.vlgmr.msra.gmra.mrb[0].mxu0 %vm489_vm1, %v4047_v32  ;;  %3346 = vmatmul.mubr.msk.bf16.vlgmr.msra.gmra.mrb[0].mxu1 %vm489_vm1, %v4051_v33  ;;  %v4098_v23 = vld [vmem:[%s4374_s24 + $0x40] sm:$0xff]   ;;  %v4107_v24 = vld [vmem:[%s5065_s3 + $0x20] sm:$0xff]   ;;  %v4109_v26 = vld [vmem:[%s5065_s3 + $0x28] sm:$0xff]  }
  0x38   : > { %666 = vmatpush1.bf16.msra.mxu0 %v4048_v34  ;;  %551 = vmatprep.mubr.bf16.mxu0 %v4237_v20  ;;  %v4110_v27 = vld [vmem:[%s5065_s3 + $0x70] sm:$0xff]   ;;  %v4112_v29 = vld [vmem:[%s5065_s3 + $0x78] sm:$0xff]   ;;  %v4114_v32 = vld [vmem:[%s5065_s3 + $0x80] sm:$0xff]  }
  0x39   : > { %667 = vmatprep.subr.bf16.mxu0 %v4054_v35  ;;  %1190 = vmatprep.mubr.bf16.mxu1 %v4237_v20  ;;  %v4111_v28 = vld [vmem:[%s5065_s3 + $0x30] sm:$0xff]   ;;  %v4113_v31 = vld [vmem:[%s5065_s3 + $0x38] sm:$0xff]   ;;  %v4115_v33 = vld [vmem:[%s5065_s3 + $0x40] sm:$0xff]  }
  0x3a   : > { %1305 = vmatpush1.bf16.msra.mxu1 %v4048_v34  ;;  %v4116_v34 = vld [vmem:[%s5065_s3 + $0x88] sm:$0xff]  }
  0x3b   : > { %1306 = vmatprep.subr.bf16.mxu1 %v4054_v35  ;;  %v930_v35 = vlaneseq }
  0x3c   : > { %668 = vmatpush1.bf16.msra.mxu0 %v4052_v36 }
  0x3d   : > { %669 = vmatprep.subr.bf16.mxu0 %v4059_v37 }
  0x3e   : > { %1307 = vmatpush1.bf16.msra.mxu1 %v4052_v36  ;;  %v931_v36 = vshrl.u32 %v930_v35, 7 }
  0x3f   : > { %3240 = vmatmul.mubr.msk.bf16.gmra.mrb[4].mxu0 %vm489_vm1, %v4055_v38  ;;  %3347 = vmatmul.mubr.msk.bf16.gmra.mrb[4].mxu1 %vm489_vm1, %v4056_v39  ;;  %v387_v38 = vld [vmem:[%s5064_s2] sm:$0x3] }
  0x40   : > { %670 = vmatpush1.bf16.msra.mxu0 %v4057_v40  ;;  %561 = vmatprep.mubr.bf16.mxu0 %v4237_v20  ;;  %v936_v39 = vsub.s32 1, %v931_v36 }
  0x41   : > { %1200 = vmatprep.mubr.bf16.mxu1 %v4237_v20  ;;  %671 = vmatprep.subr.bf16.mxu0 %v4064_v41 }
  0x42   : > { %1308 = vmatprep.subr.bf16.mxu1 %v4059_v37  ;;  %v932_v37 = vsub.s32 0, %v931_v36 }
  0x43   : > { %1309 = vmatpush1.bf16.msra.mxu1 %v4057_v40 }
  0x44   : > { %672 = vmatpush1.bf16.msra.mxu0 %v4062_v43  ;;  %1310 = vmatprep.subr.bf16.mxu1 %v4064_v41  ;;  %v4605_v40 = vrot.slane %v387_v38, %v932_v37  ;;  %v4607_v41 = vrot.slane %v387_v38, %v936_v39 }
  0x45   : > { %3257 = vmatprep.subr.msk.bf16.mxu0 %vm502_vm0, %v3256_v44 }
  0x47   : > { %3241 = vmatmul.mubr.msk.bf16.gmra.mrb[8].mxu0 %vm489_vm1, %v4060_v45  ;;  %3348 = vmatmul.mubr.msk.bf16.gmra.mrb[8].mxu1 %vm489_vm1, %v4061_v47 }
  0x48   : > { %571 = vmatprep.mubr.bf16.mxu0 %v4237_v20  ;;  %1210 = vmatprep.mubr.bf16.mxu1 %v4237_v20 }
  0x49   : > { %1311 = vmatpush1.bf16.msra.mxu1 %v4062_v43  ;;  %674 = vmatpush1.bf16.msra.mxu0 %v660_v49 }
  0x4a   : > { %3364 = vmatprep.subr.msk.bf16.mxu1 %vm502_vm0, %v3256_v44  ;;  %840 = vmatprep.subr.bf16.mxu0 %v4072_v48 }
  0x4d   : > { %1313 = vmatpush1.bf16.msra.mxu1 %v660_v49 }
  0x4e   : > { %1478 = vmatprep.subr.bf16.mxu1 %v4072_v48 }
  0x4f   : > { %3242 = vmatmul.mubr.msk.bf16.gmra.mrb[12].mxu0 %vm489_vm1, %v4065_v50  ;;  %3349 = vmatmul.mubr.msk.bf16.gmra.mrb[12].mxu1 %vm489_vm1, %v4066_v51 }
  0x50   : > { %697 = vmatprep.mubr.bf16.mxu0 %v4237_v20  ;;  %1336 = vmatprep.mubr.bf16.mxu1 %v4237_v20 }
  0x57   : > { %3258 = vmatmul.mubr.msk.bf16.vlgmr.msra.gmra.mrb[0].mxu0 %vm489_vm1, %v4069_v54  ;;  %3365 = vmatmul.mubr.msk.bf16.vlgmr.msra.gmra.mrb[0].mxu1 %vm489_vm1, %v4073_v56 }
  0x58   : > { %841 = vmatpush1.bf16.msra.mxu0 %v4070_v55  ;;  %707 = vmatprep.mubr.bf16.mxu0 %v4237_v20 }
  0x59   : > { %842 = vmatprep.subr.bf16.mxu0 %v4076_v58  ;;  %1346 = vmatprep.mubr.bf16.mxu1 %v4237_v20 }
  0x5a   : > { %1479 = vmatpush1.bf16.msra.mxu1 %v4070_v55 }
  0x5b   : > { %1480 = vmatprep.subr.bf16.mxu1 %v4076_v58 }
  0x5c   : > { %843 = vmatpush1.bf16.msra.mxu0 %v4074_v59 }
  0x5d   : > { %844 = vmatprep.subr.bf16.mxu0 %v4081_v60 }
  0x5e   : > { %1481 = vmatpush1.bf16.msra.mxu1 %v4074_v59 }
  0x5f   : > { %3259 = vmatmul.mubr.msk.bf16.gmra.mrb[4].mxu0 %vm489_vm1, %v4077_v61  ;;  %3366 = vmatmul.mubr.msk.bf16.gmra.mrb[4].mxu1 %vm489_vm1, %v4078_v62 }
  0x60   : > { %845 = vmatpush1.bf16.msra.mxu0 %v4079_v63  ;;  %717 = vmatprep.mubr.bf16.mxu0 %v4237_v20 }
  0x61   : > { %1356 = vmatprep.mubr.bf16.mxu1 %v4237_v20  ;;  %846 = vmatprep.subr.bf16.mxu0 %v4086_v0 }
  0x62   : > { %1482 = vmatprep.subr.bf16.mxu1 %v4081_v60 }
  0x63   : > { %1483 = vmatpush1.bf16.msra.mxu1 %v4079_v63 }
  0x64   : > { %847 = vmatpush1.bf16.msra.mxu0 %v4084_v1  ;;  %1484 = vmatprep.subr.bf16.mxu1 %v4086_v0 }
  0x65   : > { %3293 = vmatprep.subr.msk.bf16.mxu0 %vm502_vm0, %v3292_v4 }
  0x67   : > { %3260 = vmatmul.mubr.msk.bf16.gmra.mrb[8].mxu0 %vm489_vm1, %v4082_v2  ;;  %3367 = vmatmul.mubr.msk.bf16.gmra.mrb[8].mxu1 %vm489_vm1, %v4083_v3 }
  0x68   : > { %727 = vmatprep.mubr.bf16.mxu0 %v4237_v20  ;;  %1366 = vmatprep.mubr.bf16.mxu1 %v4237_v20 }
  0x69   : > { %1485 = vmatpush1.bf16.msra.mxu1 %v4084_v1  ;;  %849 = vmatpush1.bf16.msra.mxu0 %v835_v57 }
  0x6a   : > { %3400 = vmatprep.subr.msk.bf16.mxu1 %vm502_vm0, %v3292_v4  ;;  %1813 = vmatprep.subr.bf16.mxu0 %v4237_v20 }
  0x6d   : > { %1487 = vmatpush1.bf16.msra.mxu1 %v835_v57 }
  0x6e   : > { %1980 = vmatprep.subr.bf16.mxu1 %v4237_v20 }
  0x6f   : > { %3261 = vmatmul.mubr.msk.bf16.gmra.mrb[12].mxu0 %vm489_vm1, %v4087_v5  ;;  %3368 = vmatmul.mubr.msk.bf16.gmra.mrb[12].mxu1 %vm489_vm1, %v4088_v6 }
  0x70   : > { %872 = vmatprep.mubr.bf16.mxu0 %v4237_v20  ;;  %1510 = vmatprep.mubr.bf16.mxu1 %v4237_v20 }
  0x77   : > { %3294 = vmatmul.mubr.msk.bf16.vlgmr.msra.gmra.mrb[0].mxu0 %vm489_vm1, %v4091_v7  ;;  %3401 = vmatmul.mubr.msk.bf16.vlgmr.msra.gmra.mrb[0].mxu1 %vm489_vm1, %v4092_v8 }
  0x78   : > { %882 = vmatprep.mubr.bf16.mxu0 %v4237_v20  ;;  %1520 = vmatprep.mubr.bf16.mxu1 %v4237_v20 }
  0x79   : > { %1981 = vmatpush1.bf16.msra.mxu1 %v4099_v9  ;;  %1814 = vmatpush1.bf16.msra.mxu0 %v4100_v10 }
  0x7a   : > { %1982 = vmatprep.subr.bf16.mxu1 %v4237_v20  ;;  %1815 = vmatprep.subr.bf16.mxu0 %v4237_v20 }
  0x7d   : > { %1983 = vmatpush1.bf16.msra.mxu1 %v4101_v11  ;;  %1816 = vmatpush1.bf16.msra.mxu0 %v4102_v12 }
  0x7e   : > { %1984 = vmatprep.subr.bf16.mxu1 %v4237_v20  ;;  %1817 = vmatprep.subr.bf16.mxu0 %v4237_v20 }
  0x7f   : > { %3295 = vmatmul.mubr.msk.bf16.gmra.mrb[4].mxu0 %vm489_vm1, %v4093_v13  ;;  %3402 = vmatmul.mubr.msk.bf16.gmra.mrb[4].mxu1 %vm489_vm1, %v4094_v14 }
  0x80   : > { %892 = vmatprep.mubr.bf16.mxu0 %v4237_v20  ;;  %1530 = vmatprep.mubr.bf16.mxu1 %v4237_v20 }
  0x81   : > { %1985 = vmatpush1.bf16.msra.mxu1 %v4103_v15  ;;  %1818 = vmatpush1.bf16.msra.mxu0 %v4104_v16 }
  0x82   : > { %1986 = vmatprep.subr.bf16.mxu1 %v4237_v20  ;;  %1819 = vmatprep.subr.bf16.mxu0 %v4237_v20 }
  0x85   : > { %1987 = vmatpush1.bf16.msra.mxu1 %v4105_v17  ;;  %1820 = vmatpush1.bf16.msra.mxu0 %v4106_v18 }
  0x86   : > { %1988 = vmatprep.subr.bf16.mxu1 %v4237_v20  ;;  %1821 = vmatprep.subr.bf16.mxu0 %v4237_v20 }
  0x87   : > { %3296 = vmatmul.mubr.msk.bf16.gmra.mrb[8].mxu0 %vm489_vm1, %v4095_v19  ;;  %3403 = vmatmul.mubr.msk.bf16.gmra.mrb[8].mxu1 %vm489_vm1, %v4096_v21 }
  0x88   : > { %902 = vmatprep.mubr.bf16.mxu0 %v4237_v20  ;;  %1540 = vmatprep.mubr.bf16.mxu1 %v4237_v20 }
  0x89   : > { %1989 = vmatpush1.bf16.msra.mxu1 %v4107_v24  ;;  %1822 = vmatpush1.bf16.msra.mxu0 %v4108_v25 }
  0x8a   : > { %1990 = vmatprep.subr.bf16.mxu1 %v4237_v20  ;;  %1823 = vmatprep.subr.bf16.mxu0 %v4237_v20 }
  0x8d   : > { %1991 = vmatpush1.bf16.msra.mxu1 %v4109_v26  ;;  %1824 = vmatpush1.bf16.msra.mxu0 %v4110_v27 }
  0x8e   : > { %1992 = vmatprep.subr.bf16.mxu1 %v4237_v20  ;;  %1825 = vmatprep.subr.bf16.mxu0 %v4237_v20 }
  0x8f   : > { %3297 = vmatmul.mubr.msk.bf16.gmra.mrb[12].mxu0 %vm489_vm1, %v4097_v22  ;;  %3404 = vmatmul.mubr.msk.bf16.gmra.mrb[12].mxu1 %vm489_vm1, %v4098_v23 }
  0x91   : > { %1993 = vmatpush1.bf16.msra.mxu1 %v4111_v28  ;;  %1826 = vmatpush1.bf16.msra.mxu0 %v4112_v29  ;;  %v1657_v29 = vld [vmem:[#allocation2] sm:$0xff] }
  0x92   : > { %1994 = vmatprep.subr.bf16.mxu1 %v4237_v20  ;;  %1827 = vmatprep.subr.bf16.mxu0 %v4237_v20 }
  0x95   : > { %1995 = vmatpush1.bf16.msra.mxu1 %v4113_v31  ;;  %1828 = vmatpush1.bf16.msra.mxu0 %v4114_v32 }
  0x96   : > { %1996 = vmatprep.subr.bf16.mxu1 %v4237_v20  ;;  %1829 = vmatprep.subr.bf16.mxu0 %v4237_v20 }
  0x99   : > { %1997 = vmatpush1.bf16.msra.mxu1 %v4115_v33  ;;  %1830 = vmatpush1.bf16.msra.mxu0 %v4116_v34 }
  0x9a   : > { %2174 = vmatprep.subr.bf16.mxu0 %v4237_v20 }
 0x14a   : > { %v874_v42 = vpop.f32.mrb[0].mxu0  ;;  %v1512_v43 = vpop.f32.mrb[0].mxu1 }
 0x14b   : > { %v940_v44 = vadd.f32 %v4605_v40, %v874_v42  ;;  %v1567_v45 = vadd.f32 %v1512_v43, %v4605_v40  ;;  %v876_v46 = vpop.f32.mrb[1].mxu0  ;;  %v1514_v47 = vpop.f32.mrb[1].mxu1 }
 0x14c   : > { %v941_v48 = vadd.f32 %v4607_v41, %v876_v46  ;;  %v1568_v49 = vadd.f32 %v1514_v47, %v4607_v41  ;;  %v878_v50 = vpop.f32.mrb[2].mxu0  ;;  %v1516_v51 = vpop.f32.mrb[2].mxu1 }
 0x14d   : > { %v956_v52 = vmax.f32 %v940_v44, 0.0  ;;  %v1583_v53 = vmax.f32 %v1567_v45, 0.0  ;;  %v942_v54 = vadd.f32 %v4605_v40, %v878_v50  ;;  %v1569_v55 = vadd.f32 %v1516_v51, %v4605_v40  ;;  %v880_v56 = vpop.f32.mrb[3].mxu0  ;;  %v1518_v57 = vpop.f32.mrb[3].mxu1 }
 0x14e   : > { %v957_v58 = vmax.f32 %v941_v48, 0.0  ;;  %v1584_v59 = vmax.f32 %v1568_v49, 0.0  ;;  %v943_v60 = vadd.f32 %v4607_v41, %v880_v56  ;;  %v1570_v61 = vadd.f32 %v1518_v57, %v4607_v41 }
 0x14f   : > { %v958_v62 = vmax.f32 %v942_v54, 0.0  ;;  %v1585_v63 = vmax.f32 %v1569_v55, 0.0  ;;  %v4122_v54 = vld [vmem:[%s5065_s3 + $0x90] sm:$0xff]  }
 0x150   : > { %v3692_v0 = vpack.c.bf16 %v957_v58, %v956_v52  ;;  %v3700_v1 = vpack.c.bf16 %v1584_v59, %v1583_v53  ;;  %v959_v2 = vmax.f32 %v943_v60, 0.0  ;;  %v1586_v3 = vmax.f32 %v1570_v61, 0.0 }
 0x152   : > { %1023 = vst.msk [vmem:[#allocation2 + $0x48] sm:$0xff] %vm4578_vm3, %v3692_v0  ;;  %1648 = vst.msk [vmem:[#allocation2 + $0x8] sm:$0xff] %vm4578_vm3, %v3700_v1  ;;  %v3693_v4 = vpack.c.bf16 %v959_v2, %v958_v62  ;;  %v3701_v5 = vpack.c.bf16 %v1586_v3, %v1585_v63  ;;  %v884_v6 = vpop.f32.mrb[4].mxu0  ;;  %v1522_v7 = vpop.f32.mrb[4].mxu1 }
 0x153   : > { %v944_v8 = vadd.f32 %v4605_v40, %v884_v6  ;;  %v1571_v9 = vadd.f32 %v1522_v7, %v4605_v40  ;;  %v886_v10 = vpop.f32.mrb[5].mxu0  ;;  %v1524_v11 = vpop.f32.mrb[5].mxu1  ;;  %v4123_v7 = vld [vmem:[%s5065_s3 + $0x98] sm:$0xff]  }
 0x154   : > { %1024 = vst.msk [vmem:[#allocation2 + $0x50] sm:$0xff] %vm4578_vm3, %v3693_v4  ;;  %1649 = vst.msk [vmem:[#allocation2 + $0x10] sm:$0xff] %vm4578_vm3, %v3701_v5  ;;  %v945_v12 = vadd.f32 %v4607_v41, %v886_v10  ;;  %v1572_v13 = vadd.f32 %v1524_v11, %v4607_v41  ;;  %v888_v14 = vpop.f32.mrb[6].mxu0  ;;  %v1526_v15 = vpop.f32.mrb[6].mxu1 }
 0x155   : > { %v960_v16 = vmax.f32 %v944_v8, 0.0  ;;  %v1587_v17 = vmax.f32 %v1571_v9, 0.0  ;;  %v946_v18 = vadd.f32 %v4605_v40, %v888_v14  ;;  %v1573_v19 = vadd.f32 %v1526_v15, %v4605_v40  ;;  %v890_v21 = vpop.f32.mrb[7].mxu0  ;;  %v1528_v22 = vpop.f32.mrb[7].mxu1 }
 0x156   : > { %v961_v23 = vmax.f32 %v945_v12, 0.0  ;;  %v1588_v24 = vmax.f32 %v1572_v13, 0.0  ;;  %v947_v25 = vadd.f32 %v4607_v41, %v890_v21  ;;  %v1574_v26 = vadd.f32 %v1528_v22, %v4607_v41 }
 0x157   : > { %v962_v27 = vmax.f32 %v946_v18, 0.0  ;;  %v1589_v28 = vmax.f32 %v1573_v19, 0.0 }
 0x158   : > { %v3694_v31 = vpack.c.bf16 %v961_v23, %v960_v16  ;;  %v3702_v32 = vpack.c.bf16 %v1588_v24, %v1587_v17  ;;  %v963_v33 = vmax.f32 %v947_v25, 0.0  ;;  %v1590_v34 = vmax.f32 %v1574_v26, 0.0 }
 0x159   : > { %v4633_v35 = vld [vmem:[#allocation2 + $0x8] sm:$0xff] }
 0x15a   : > { %1025 = vst.msk [vmem:[#allocation2 + $0x58] sm:$0xff] %vm4578_vm3, %v3694_v31  ;;  %1650 = vst.msk [vmem:[#allocation2 + $0x18] sm:$0xff] %vm4578_vm3, %v3702_v32  ;;  %v3695_v36 = vpack.c.bf16 %v963_v33, %v962_v27  ;;  %v3703_v37 = vpack.c.bf16 %v1590_v34, %v1589_v28  ;;  %v894_v38 = vpop.f32.mrb[8].mxu0  ;;  %v1532_v39 = vpop.f32.mrb[8].mxu1  ;;  %v3452_v42 = vcombine.low %v1657_v29, %v4633_v35  ;;  %v4128_v27 = vld [vmem:[%s5065_s3 + $0xa0] sm:$0xff]  }
 0x15b   : > { %v3453_v43 = vcombine.high %v1657_v29, %v4633_v35  ;;  %v948_v44 = vadd.f32 %v4605_v40, %v894_v38  ;;  %v1575_v45 = vadd.f32 %v1532_v39, %v4605_v40  ;;  %v896_v46 = vpop.f32.mrb[9].mxu0  ;;  %v1534_v47 = vpop.f32.mrb[9].mxu1  ;;  %v4119_v48 = vld [vmem:[#allocation2 + $0x48] ss:$8 sps:$4 sm:$0xff]   ;;  %v4121_v53 = vld [vmem:[#allocation2 + $0x4c] ss:$8 sps:$4 sm:$0xff]  }
 0x15c   : > { %1026 = vst.msk [vmem:[#allocation2 + $0x60] sm:$0xff] %vm4578_vm3, %v3695_v36  ;;  %1651 = vst.msk [vmem:[#allocation2 + $0x20] sm:$0xff] %vm4578_vm3, %v3703_v37  ;;  %v949_v49 = vadd.f32 %v4607_v41, %v896_v46  ;;  %v1576_v50 = vadd.f32 %v1534_v47, %v4607_v41  ;;  %v898_v51 = vpop.f32.mrb[10].mxu0  ;;  %v1536_v52 = vpop.f32.mrb[10].mxu1  ;;  %3448 = vmatprep.mubr.msk.bf16.mxu0 %vm1800_vm4, %v4121_v53  ;;  %v4662_v8 = vld [vmem:[#allocation2 + $0x10] sm:$0xff]  ;;  %v4129_v47 = vld [vmem:[%s5065_s3 + $0xa8] sm:$0xff]  }
 0x15d   : > { %3469 = vmatprep.mubr.msk.bf16.mxu1 %vm1800_vm4, %v3453_v43  ;;  %v964_v55 = vmax.f32 %v948_v44, 0.0  ;;  %v1591_v56 = vmax.f32 %v1575_v45, 0.0  ;;  %v950_v57 = vadd.f32 %v4605_v40, %v898_v51  ;;  %v1577_v58 = vadd.f32 %v1536_v52, %v4605_v40  ;;  %v900_v59 = vpop.f32.mrb[11].mxu0  ;;  %v1538_v60 = vpop.f32.mrb[11].mxu1  ;;  %1846 = vmatmul.mubr.bf16.vlgmr.msra.gmra.mrb[16].mxu0 %v4119_v48 }
 0x15e   : > { %2013 = vmatmul.mubr.bf16.vlgmr.msra.gmra.mrb[16].mxu1 %v3452_v42  ;;  %v965_v61 = vmax.f32 %v949_v49, 0.0  ;;  %v1592_v62 = vmax.f32 %v1576_v50, 0.0  ;;  %v951_v63 = vadd.f32 %v4607_v41, %v900_v59  ;;  %v1578_v0 = vadd.f32 %v1538_v60, %v4607_v41  ;;  %2175 = vmatpush1.bf16.msra.mxu0 %v4122_v54 }
 0x15f   : > { %v966_v1 = vmax.f32 %v950_v57, 0.0  ;;  %v1593_v2 = vmax.f32 %v1577_v58, 0.0  ;;  %2176 = vmatprep.subr.bf16.mxu0 %v4237_v20 }
 0x160   : > { %v3696_v3 = vpack.c.bf16 %v965_v61, %v964_v55  ;;  %v3704_v4 = vpack.c.bf16 %v1592_v62, %v1591_v56  ;;  %v967_v5 = vmax.f32 %v951_v63, 0.0  ;;  %v1594_v6 = vmax.f32 %v1578_v0, 0.0  ;;  %v4135_v55 = vld [vmem:[%s5065_s3 + $0xb0] sm:$0xff]   ;;  %v4136_v56 = vld [vmem:[%s5065_s3 + $0xb8] sm:$0xff]   ;;  %v4142_v62 = vld [vmem:[%s5065_s3 + $0xc0] sm:$0xff]  }
 0x161   : > { %v4664_v9 = vld [vmem:[#allocation2 + $0x18] sm:$0xff]  ;;  %v3492_v63 = vcombine.high %v4633_v35, %v4662_v8  ;;  %v4143_v0 = vld [vmem:[%s5065_s3 + $0xc8] sm:$0xff]  }
 0x162   : > { %1027 = vst.msk [vmem:[#allocation2 + $0x68] sm:$0xff] %vm4578_vm3, %v3696_v3  ;;  %1652 = vst.msk [vmem:[#allocation2 + $0x28] sm:$0xff] %vm4578_vm3, %v3704_v4  ;;  %v3697_v10 = vpack.c.bf16 %v967_v5, %v966_v1  ;;  %v3705_v11 = vpack.c.bf16 %v1594_v6, %v1593_v2  ;;  %v904_v12 = vpop.f32.mrb[12].mxu0  ;;  %v1542_v13 = vpop.f32.mrb[12].mxu1  ;;  %v3455_v14 = vcombine.high %v4662_v8, %v4664_v9  ;;  %2177 = vmatpush1.bf16.msra.mxu0 %v4123_v7  ;;  %v4144_v1 = vld [vmem:[%s5065_s3 + $0xd0] sm:$0xff]  }
 0x163   : > { %v3454_v15 = vcombine.low %v4662_v8, %v4664_v9  ;;  %v952_v16 = vadd.f32 %v4605_v40, %v904_v12  ;;  %v1579_v17 = vadd.f32 %v1542_v13, %v4605_v40  ;;  %v906_v18 = vpop.f32.mrb[13].mxu0  ;;  %v1544_v19 = vpop.f32.mrb[13].mxu1  ;;  %v4125_v21 = vld [vmem:[#allocation2 + $0x5c] ss:$8 sps:$4 sm:$0xff]   ;;  %v4127_v26 = vld [vmem:[#allocation2 + $0x58] ss:$8 sps:$4 sm:$0xff]   ;;  %2178 = vmatprep.subr.bf16.mxu0 %v4237_v20  ;;  %v3491_v2 = vcombine.low %v4633_v35, %v4662_v8 }
 0x164   : > { %1028 = vst.msk [vmem:[#allocation2 + $0x70] sm:$0xff] %vm4578_vm3, %v3697_v10  ;;  %1653 = vst.msk [vmem:[#allocation2 + $0x30] sm:$0xff] %vm4578_vm3, %v3705_v11  ;;  %v953_v22 = vadd.f32 %v4607_v41, %v906_v18  ;;  %v1580_v23 = vadd.f32 %v1544_v19, %v4607_v41  ;;  %v908_v24 = vpop.f32.mrb[14].mxu0  ;;  %v1546_v25 = vpop.f32.mrb[14].mxu1  ;;  %3470 = vmatprep.mubr.msk.bf16.mxu1 %vm1800_vm4, %v3455_v14  ;;  %3449 = vmatprep.mubr.msk.bf16.mxu0 %vm1800_vm4, %v4125_v21  ;;  %v1661_v48 = vld [vmem:[#allocation2 + $0x20] sm:$0xff]  ;;  %v4238_v35 = vmov 0.0  }
 0x165   : > { %v968_v28 = vmax.f32 %v952_v16, 0.0  ;;  %v1595_v29 = vmax.f32 %v1579_v17, 0.0  ;;  %v954_v31 = vadd.f32 %v4605_v40, %v908_v24  ;;  %v1581_v32 = vadd.f32 %v1546_v25, %v4605_v40  ;;  %v910_v33 = vpop.f32.mrb[15].mxu0  ;;  %v1548_v34 = vpop.f32.mrb[15].mxu1  ;;  %1854 = vmatmul.mubr.bf16.gmra.mrb[20].mxu0 %v4127_v26  ;;  %3780 = vmatprep.subr.bf16.mxu1 %v4238_v35  ;;  %v4149_v8 = vld [vmem:[%s5067_s5 + $0x40] sm:$0xff]   ;;  %v4152_v12 = vld [vmem:[%s5067_s5 + $0x50] sm:$0xff]  }
 0x166   : > { %2021 = vmatmul.mubr.bf16.gmra.mrb[20].mxu1 %v3454_v15  ;;  %v969_v36 = vmax.f32 %v953_v22, 0.0  ;;  %v1596_v37 = vmax.f32 %v1580_v23, 0.0  ;;  %v955_v38 = vadd.f32 %v4607_v41, %v910_v33  ;;  %v1582_v39 = vadd.f32 %v1548_v34, %v4607_v41  ;;  %2179 = vmatpush1.bf16.msra.mxu0 %v4128_v27  ;;  %v4151_v11 = vld [vmem:[%s5067_s5 + $0x80] sm:$0xff]   ;;  %v4153_v13 = vld [vmem:[%s5067_s5 + $0x88] sm:$0xff]   ;;  %v4154_v14 = vld [vmem:[%s5067_s5 + $0x58] sm:$0xff]  }
 0x167   : > { %v970_v42 = vmax.f32 %v954_v31, 0.0  ;;  %v1597_v43 = vmax.f32 %v1581_v32, 0.0  ;;  %2180 = vmatprep.subr.bf16.mxu0 %v4237_v20  ;;  %v3494_v3 = vcombine.high %v4664_v9, %v1661_v48  ;;  %v3493_v4 = vcombine.low %v4664_v9, %v1661_v48  ;;  %3781 = vmatpush3.bf16.msra.mxu1 %v4149_v8  ;;  %v4150_v9 = vld [vmem:[%s5067_s5 + $0x48] sm:$0xff]   ;;  %v4155_v15 = vld [vmem:[%s5067_s5 + $0x90] sm:$0xff]   ;;  %v4156_v16 = vld [vmem:[%s5067_s5 + $0x60] sm:$0xff]  }
 0x168   : > { %v3698_v44 = vpack.c.bf16 %v969_v36, %v968_v28  ;;  %v3706_v45 = vpack.c.bf16 %v1596_v37, %v1595_v29  ;;  %v971_v46 = vmax.f32 %v955_v38, 0.0  ;;  %v1598_v40 = vmax.f32 %v1582_v39, 0.0  ;;  %3782 = vmatprep.subr.bf16.mxu1 %v4238_v35  ;;  %v4157_v17 = vld [vmem:[%s5067_s5 + $0x98] sm:$0xff]   ;;  %v4158_v18 = vld [vmem:[%s5067_s5 + $0x68] sm:$0xff]   ;;  %v4159_v19 = vld [vmem:[%s5067_s5 + $0xa0] sm:$0xff]  }
 0x169   : > { %v1662_v49 = vld [vmem:[#allocation2 + $0x28] sm:$0xff]  ;;  %v4160_v21 = vld [vmem:[%s5067_s5 + $0x70] sm:$0xff]   ;;  %v4162_v23 = vld [vmem:[%s5067_s5 + $0x78] sm:$0xff]  }
 0x16a   : > { %1029 = vst.msk [vmem:[#allocation2 + $0x78] sm:$0xff] %vm4578_vm3, %v3698_v44  ;;  %1654 = vst.msk [vmem:[#allocation2 + $0x38] sm:$0xff] %vm4578_vm3, %v3706_v45  ;;  %v3699_v41 = vpack.c.bf16 %v971_v46, %v970_v42  ;;  %v3707_v50 = vpack.c.bf16 %v1598_v40, %v1597_v43  ;;  %v3457_v51 = vcombine.high %v1661_v48, %v1662_v49  ;;  %2181 = vmatpush1.bf16.msra.mxu0 %v4129_v47  ;;  %v4161_v22 = vld [vmem:[%s5067_s5 + $0xa8] sm:$0xff]   ;;  %v4163_v24 = vld [vmem:[%s5067_s5 + $0xb0] sm:$0xff]  }
 0x16b   : > { %v3456_v52 = vcombine.low %v1661_v48, %v1662_v49  ;;  %v4132_v53 = vld [vmem:[#allocation2 + $0x6c] ss:$8 sps:$4 sm:$0xff]   ;;  %v4134_v54 = vld [vmem:[#allocation2 + $0x68] ss:$8 sps:$4 sm:$0xff]   ;;  %2182 = vmatprep.subr.bf16.mxu0 %v4237_v20  ;;  %3783 = vmatpush3.bf16.msra.mxu1 %v4150_v9  ;;  %v4165_v25 = vld [vmem:[%s5067_s5 + $0xb8] sm:$0xff]  }
 0x16c   : > { %1030 = vst.msk [vmem:[#allocation2 + $0x80] sm:$0xff] %vm4578_vm3, %v3699_v41  ;;  %1655 = vst.msk [vmem:[#allocation2 + $0x40] sm:$0xff] %vm4578_vm3, %v3707_v50  ;;  %3471 = vmatprep.mubr.msk.bf16.mxu1 %vm1800_vm4, %v3457_v51  ;;  %3450 = vmatprep.mubr.msk.bf16.mxu0 %vm1800_vm4, %v4132_v53  ;;  %v1663_v30 = vld [vmem:[#allocation2 + $0x30] sm:$0xff] }
 0x16d   : > { %1862 = vmatmul.mubr.bf16.gmra.mrb[24].mxu0 %v4134_v54  ;;  %v3496_v5 = vcombine.high %v1662_v49, %v1663_v30  ;;  %v3495_v7 = vcombine.low %v1662_v49, %v1663_v30  ;;  %3784 = vmatprep.subr.bf16.mxu1 %v4238_v35 }
 0x16e   : > { %2029 = vmatmul.mubr.bf16.gmra.mrb[24].mxu1 %v3456_v52  ;;  %2183 = vmatpush1.bf16.msra.mxu0 %v4135_v55 }
 0x16f   : > { %2184 = vmatprep.subr.bf16.mxu0 %v4237_v20  ;;  %3785 = vmatpush3.bf16.msra.mxu1 %v4152_v12 }
 0x170   : > { %3786 = vmatprep.subr.bf16.mxu1 %v4238_v35 }
 0x171   : > { %v1664_v57 = vld [vmem:[#allocation2 + $0x38] sm:$0xff] }
 0x172   : > { %v3459_v58 = vcombine.high %v1663_v30, %v1664_v57  ;;  %v3458_v59 = vcombine.low %v1663_v30, %v1664_v57  ;;  %2185 = vmatpush1.bf16.msra.mxu0 %v4136_v56 }
 0x173   : > { %v4139_v60 = vld [vmem:[#allocation2 + $0x7c] ss:$8 sps:$4 sm:$0xff]   ;;  %v4141_v61 = vld [vmem:[#allocation2 + $0x78] ss:$8 sps:$4 sm:$0xff]   ;;  %2186 = vmatprep.subr.bf16.mxu0 %v4237_v20  ;;  %3787 = vmatpush3.bf16.msra.mxu1 %v4154_v14 }
 0x174   : > { %3472 = vmatprep.mubr.msk.bf16.mxu1 %vm1800_vm4, %v3459_v58  ;;  %3451 = vmatprep.mubr.msk.bf16.mxu0 %vm1800_vm4, %v4139_v60  ;;  %v2052_v6 = vld [vmem:[#allocation2 + $0x40] sm:$0xff] }
 0x175   : > { %1870 = vmatmul.mubr.bf16.gmra.mrb[28].mxu0 %v4141_v61  ;;  %v3498_v10 = vcombine.high %v1664_v57, %v2052_v6  ;;  %3788 = vmatprep.subr.bf16.mxu1 %v4238_v35 }
 0x176   : > { %2037 = vmatmul.mubr.bf16.gmra.mrb[28].mxu1 %v3458_v59  ;;  %2187 = vmatpush1.bf16.msra.mxu0 %v4142_v62 }
 0x177   : > { %3508 = vmatprep.mubr.msk.bf16.mxu0 %vm1800_vm4, %v3492_v63  ;;  %2188 = vmatprep.subr.bf16.mxu0 %v4237_v20 }
 0x178   : > { %3789 = vmatpush3.bf16.msra.mxu1 %v4156_v16  ;;  %3796 = vmatprep.mubr.msk.bf16.mxu1 %vm4239_vm5, %v4238_v35 }
 0x179   : > { %3790 = vmatprep.subr.bf16.mxu1 %v4238_v35 }
 0x17a   : > { %2189 = vmatpush1.bf16.msra.mxu0 %v4143_v0 }
 0x17b   : > { %2190 = vmatprep.subr.bf16.mxu0 %v4237_v20  ;;  %v3497_v20 = vcombine.low %v1664_v57, %v2052_v6 }
 0x17c   : > { %3791 = vmatpush3.bf16.msra.mxu1 %v4158_v18  ;;  %v4164_v18 = vld [vmem:[%s5067_s5] sm:$0xff]  }
 0x17d   : > { %3792 = vmatprep.subr.bf16.mxu1 %v4238_v35 }
 0x17e   : > { %2191 = vmatpush1.bf16.msra.mxu0 %v4144_v1 }
 0x17f   : > { %3820 = vmatprep.subr.bf16.mxu0 %v4238_v35 }
 0x180   : > { %3793 = vmatpush3.bf16.msra.mxu1 %v4160_v21 }
 0x181   : > { %2207 = vmatmul.mubr.bf16.vlgmr.msra.gmra.mrb[32].mxu0 %v3491_v2  ;;  %3794 = vmatprep.subr.bf16.mxu1 %v4238_v35 }
 0x182   : > { %3509 = vmatprep.mubr.msk.bf16.mxu0 %vm1800_vm4, %v3494_v3  ;;  %3821 = vmatpush3.bf16.msra.mxu0 %v4151_v11 }
 0x183   : > { %3822 = vmatprep.subr.bf16.mxu0 %v4238_v35 }
 0x184   : > { %3795 = vmatpush3.bf16.msra.mxu1 %v4162_v23 }
 0x185   : > { %3800 = vmatprep.subr.bf16.mxu1 %v4238_v35 }
 0x186   : > { %3823 = vmatpush3.bf16.msra.mxu0 %v4153_v13 }
 0x187   : > { %3824 = vmatprep.subr.bf16.mxu0 %v4238_v35 }
 0x189   : > { %2215 = vmatmul.mubr.bf16.gmra.mrb[36].mxu0 %v3493_v4  ;;  %v4813_v4 = vld [vmem:[%s5066_s4] ss:$0 sm:$0xff] }
 0x18a   : > { %3510 = vmatprep.mubr.msk.bf16.mxu0 %vm1800_vm4, %v3496_v5  ;;  %3825 = vmatpush3.bf16.msra.mxu0 %v4155_v15 }
 0x18b   : > { %3826 = vmatprep.subr.bf16.mxu0 %v4238_v35 }
 0x18e   : > { %3827 = vmatpush3.bf16.msra.mxu0 %v4157_v17 }
 0x18f   : > { %3828 = vmatprep.subr.bf16.mxu0 %v4238_v35 }
 0x191   : > { %2223 = vmatmul.mubr.bf16.gmra.mrb[40].mxu0 %v3495_v7 }
 0x192   : > { %3511 = vmatprep.mubr.msk.bf16.mxu0 %vm1800_vm4, %v3498_v10  ;;  %3829 = vmatpush3.bf16.msra.mxu0 %v4159_v19 }
 0x193   : > { %3830 = vmatprep.subr.bf16.mxu0 %v4238_v35 }
 0x196   : > { %3831 = vmatpush3.bf16.msra.mxu0 %v4161_v22 }
 0x197   : > { %3832 = vmatprep.subr.bf16.mxu0 %v4238_v35 }
 0x199   : > { %2231 = vmatmul.mubr.bf16.gmra.mrb[44].mxu0 %v3497_v20 }
 0x19a   : > { %3833 = vmatpush3.bf16.msra.mxu0 %v4163_v24  ;;  %3836 = vmatprep.mubr.msk.bf16.mxu0 %vm4239_vm5, %v4238_v35 }
 0x19b   : > { %3834 = vmatprep.subr.bf16.mxu0 %v4238_v35 }
 0x19e   : > { %3835 = vmatpush3.bf16.msra.mxu0 %v4165_v25  ;;  %v4166_v25 = vld [vmem:[%s5067_s5 + $0x8] sm:$0xff]  }
 0x19f   : > { %3860 = vmatprep.subr.bf16.mxu0 %v4238_v35 }
 0x230   : > { %v1847_v28 = vpop.f32.mrb[16].mxu0 }
 0x231   : > { %v2014_v26 = vpop.f32.mrb[16].mxu1  ;;  %v1849_v32 = vpop.f32.mrb[17].mxu0 }
 0x232   : > { %v2016_v27 = vpop.f32.mrb[17].mxu1  ;;  %v2015_v31 = vadd.f32 %v2014_v26, %v1847_v28  ;;  %v1850_v34 = vpop.f32.mrb[18].mxu0 }
 0x233   : > { %v2017_v29 = vpop.f32.mrb[18].mxu1  ;;  %v1852_v37 = vpop.f32.mrb[19].mxu0 }
 0x234   : > { %v2019_v33 = vpop.f32.mrb[19].mxu1  ;;  %v2018_v36 = vadd.f32 %v2017_v29, %v1850_v34  ;;  %v4167_v29 = vld [vmem:[%s5067_s5 + $0x100] sm:$0xff]  }
 0x238   : > { %v1855_v42 = vpop.f32.mrb[20].mxu0 }
 0x239   : > { %v2022_v38 = vpop.f32.mrb[20].mxu1  ;;  %v1857_v45 = vpop.f32.mrb[21].mxu0 }
 0x23a   : > { %v2024_v39 = vpop.f32.mrb[21].mxu1  ;;  %v2023_v44 = vadd.f32 %v2022_v38, %v1855_v42  ;;  %v1858_v40 = vpop.f32.mrb[22].mxu0  ;;  %v4169_v42 = vld [vmem:[%s5067_s5 + $0x108] sm:$0xff]  }
 0x23b   : > { %v2025_v43 = vpop.f32.mrb[22].mxu1  ;;  %v1860_v48 = vpop.f32.mrb[23].mxu0 }
 0x23c   : > { %v2027_v46 = vpop.f32.mrb[23].mxu1  ;;  %v2026_v47 = vadd.f32 %v2025_v43, %v1858_v40 }
 0x240   : > { %v1863_v50 = vpop.f32.mrb[24].mxu0 }
 0x241   : > { %v2030_v49 = vpop.f32.mrb[24].mxu1  ;;  %v1865_v53 = vpop.f32.mrb[25].mxu0 }
 0x242   : > { %v2032_v41 = vpop.f32.mrb[25].mxu1  ;;  %v2031_v52 = vadd.f32 %v2030_v49, %v1863_v50  ;;  %v1866_v55 = vpop.f32.mrb[26].mxu0 }
 0x243   : > { %v2033_v51 = vpop.f32.mrb[26].mxu1  ;;  %v1868_v30 = vpop.f32.mrb[27].mxu0 }
 0x244   : > { %v2035_v54 = vpop.f32.mrb[27].mxu1  ;;  %v2034_v56 = vadd.f32 %v2033_v51, %v1866_v55  ;;  %v4172_v51 = vld [vmem:[%s5067_s5 + $0x20] sm:$0xff]   ;;  %v4173_v55 = vld [vmem:[%s5067_s5 + $0x118] sm:$0xff]   ;;  %v4174_v30 = vld [vmem:[%s5067_s5 + $0x28] sm:$0xff]  }
 0x248   : > { %v1871_v59 = vpop.f32.mrb[28].mxu0 }
 0x249   : > { %v2038_v57 = vpop.f32.mrb[28].mxu1  ;;  %v1873_v62 = vpop.f32.mrb[29].mxu0 }
 0x24a   : > { %v2040_v58 = vpop.f32.mrb[29].mxu1  ;;  %v2039_v61 = vadd.f32 %v2038_v57, %v1871_v59  ;;  %v1874_v0 = vpop.f32.mrb[30].mxu0  ;;  %v4175_v59 = vld [vmem:[%s5067_s5 + $0x120] sm:$0xff]   ;;  %v4177_v62 = vld [vmem:[%s5067_s5 + $0x128] sm:$0xff]  }
 0x24b   : > { %v2041_v60 = vpop.f32.mrb[30].mxu1  ;;  %v1876_v2 = vpop.f32.mrb[31].mxu0 }
 0x24c   : > { %v2043_v63 = vpop.f32.mrb[31].mxu1  ;;  %v4808_v1 = vadd.f32 %v2041_v60, %v1874_v0  ;;  %v4179_v0 = vld [vmem:[%s5067_s5 + $0x130] sm:$0xff]   ;;  %v4181_v2 = vld [vmem:[%s5067_s5 + $0x138] sm:$0xff]  }
 0x24d   : > { %v4178_v63 = vld [vmem:[%s5067_s5 + $0x38] sm:$0xff]  }
 0x254   : > { %v2208_v3 = vpop.f32.mrb[32].mxu0 }
 0x255   : > { %v2239_v5 = vadd.f32 %v2208_v3, %v2015_v31  ;;  %v2210_v6 = vpop.f32.mrb[33].mxu0  ;;  %v4182_v3 = vld [vmem:[%s5067_s5 + $0xc8] sm:$0xff]  }
 0x256   : > { %v2211_v7 = vpop.f32.mrb[34].mxu0  ;;  %v4185_v6 = vld [vmem:[%s5067_s5 + $0x188] sm:$0xff]  }
 0x257   : > { %v2254_v10 = vadd.f32 %v4813_v4, %v2239_v5  ;;  %v2240_v20 = vadd.f32 %v2211_v7, %v2018_v36  ;;  %v2213_v8 = vpop.f32.mrb[35].mxu0  ;;  %v4168_v36 = vld [vmem:[%s5067_s5 + $0x10] sm:$0xff]   ;;  %v4186_v7 = vld [vmem:[%s5067_s5 + $0xd8] sm:$0xff]  }
 0x258   : > { %v4184_v5 = vld [vmem:[%s5067_s5 + $0xd0] sm:$0xff]   ;;  %v4189_v8 = vld [vmem:[%s5067_s5 + $0x198] sm:$0xff]  }
 0x259   : > { %v2255_v9 = vadd.f32 %v4813_v4, %v2240_v20  ;;  %v2262_v11 = vmax.f32 %v2254_v10, 0.0  ;;  %v4187_v10 = vld [vmem:[%s5067_s5 + $0x190] sm:$0xff]   ;;  %v4188_v20 = vld [vmem:[%s5067_s5 + $0xe0] sm:$0xff]  }
 0x25b   : > { %v2263_v12 = vmax.f32 %v2255_v9, 0.0  ;;  %v4190_v9 = vld [vmem:[%s5067_s5 + $0xe8] sm:$0xff]  }
 0x25c   : > { %v2216_v13 = vpop.f32.mrb[36].mxu0 }
 0x25d   : > { %v4817_v14 = vpack.c.bf16 %v2263_v12, %v2262_v11  ;;  %v2241_v15 = vadd.f32 %v2216_v13, %v2023_v44  ;;  %v2218_v16 = vpop.f32.mrb[37].mxu0  ;;  %v4170_v44 = vld [vmem:[%s5067_s5 + $0x18] sm:$0xff]   ;;  %v4191_v11 = vld [vmem:[%s5067_s5 + $0x1a0] sm:$0xff]   ;;  %v4192_v12 = vld [vmem:[%s5067_s5 + $0xf0] sm:$0xff]  }
 0x25e   : > { %v2219_v17 = vpop.f32.mrb[38].mxu0  ;;  %v4193_v13 = vld [vmem:[%s5067_s5 + $0x1a8] sm:$0xff]   ;;  %v4196_v16 = vld [vmem:[%s5067_s5 + $0x140] sm:$0xff]  }
 0x25f   : > { %v2308_v19 = vrot.slane %v4817_v14, 4  ;;  %v2256_v21 = vadd.f32 %v4813_v4, %v2241_v15  ;;  %v2242_v22 = vadd.f32 %v2219_v17, %v2026_v47  ;;  %v2221_v23 = vpop.f32.mrb[39].mxu0  ;;  %v4171_v47 = vld [vmem:[%s5067_s5 + $0x110] sm:$0xff]  }
 0x260   : > { %v4195_v15 = vld [vmem:[%s5067_s5 + $0x1b0] sm:$0xff]   ;;  %v4201_v23 = vld [vmem:[%s5067_s5 + $0x160] sm:$0xff]  }
 0x261   : > { %v2257_v24 = vadd.f32 %v4813_v4, %v2242_v22  ;;  %3797 = vmatmul.mubr.bf16.vlgmr.msra.gmra.mrb[32].mxu1 %v2308_v19  ;;  %v2264_v26 = vmax.f32 %v2256_v21, 0.0  ;;  %v4198_v19 = vld [vmem:[%s5067_s5 + $0x148] sm:$0xff]   ;;  %v4199_v21 = vld [vmem:[%s5067_s5 + $0x150] sm:$0xff]   ;;  %v4200_v22 = vld [vmem:[%s5067_s5 + $0x158] sm:$0xff]  }
 0x262   : > { %3801 = vmatpush3.bf16.msra.mxu1 %v4164_v18  ;;  %3816 = vmatprep.mubr.msk.bf16.mxu1 %vm4239_vm5, %v4238_v35  ;;  %v4197_v18 = vld [vmem:[%s5067_s5 + $0x1b8] sm:$0xff]  }
 0x263   : > { %v2265_v27 = vmax.f32 %v2257_v24, 0.0  ;;  %3802 = vmatprep.subr.bf16.mxu1 %v4238_v35  ;;  %v4202_v24 = vld [vmem:[%s5067_s5 + $0x168] sm:$0xff]  }
 0x264   : > { %v2224_v28 = vpop.f32.mrb[40].mxu0 }
 0x265   : > { %v4834_v31 = vpack.c.bf16 %v2265_v27, %v2264_v26  ;;  %v2243_v32 = vadd.f32 %v2224_v28, %v2031_v52  ;;  %v2226_v33 = vpop.f32.mrb[41].mxu0  ;;  %v4204_v26 = vld [vmem:[%s5067_s5 + $0x178] sm:$0xff]   ;;  %v4205_v27 = vld [vmem:[%s5067_s5 + $0x1c0] sm:$0xff]  }
 0x266   : > { %3803 = vmatpush3.bf16.msra.mxu1 %v4166_v25  ;;  %v2227_v34 = vpop.f32.mrb[42].mxu0  ;;  %v4203_v25 = vld [vmem:[%s5067_s5 + $0x170] sm:$0xff]   ;;  %v4209_v33 = vld [vmem:[%s5067_s5 + $0x1e0] sm:$0xff]  }
 0x267   : > { %v2258_v37 = vadd.f32 %v4813_v4, %v2243_v32  ;;  %v2244_v38 = vadd.f32 %v2227_v34, %v2034_v56  ;;  %v2229_v39 = vpop.f32.mrb[43].mxu0  ;;  %3837 = vmatmul.mubr.bf16.vlgmr.msra.gmra.mrb[48].mxu0 %v4834_v31  ;;  %3804 = vmatprep.subr.bf16.mxu1 %v4238_v35  ;;  %v2610_v17 = vrot.slane %v4834_v31, 4  ;;  %v4207_v31 = vld [vmem:[%s5067_s5 + $0x1d0] sm:$0xff]   ;;  %v4208_v32 = vld [vmem:[%s5067_s5 + $0x1d8] sm:$0xff]   ;;  %v4210_v34 = vld [vmem:[%s5067_s5 + $0x1e8] sm:$0xff]  }
 0x268   : > { %3861 = vmatpush3.bf16.msra.mxu0 %v4167_v29  ;;  %3876 = vmatprep.mubr.msk.bf16.mxu0 %vm4239_vm5, %v4238_v35  ;;  %v4206_v29 = vld [vmem:[%s5067_s5 + $0x1c8] sm:$0xff]  }
 0x269   : > { %v2259_v43 = vadd.f32 %v4813_v4, %v2244_v38  ;;  %3862 = vmatprep.subr.bf16.mxu0 %v4238_v35  ;;  %v2266_v45 = vmax.f32 %v2258_v37, 0.0  ;;  %v4212_v37 = vld [vmem:[%s5067_s5 + $0x1f8] sm:$0xff]  }
 0x26a   : > { %3805 = vmatpush3.bf16.msra.mxu1 %v4168_v36  ;;  %v4211_v36 = vld [vmem:[%s5067_s5 + $0x1f0] sm:$0xff]  }
 0x26b   : > { %v2267_v46 = vmax.f32 %v2259_v43, 0.0  ;;  %3806 = vmatprep.subr.bf16.mxu1 %v4238_v35 }
 0x26c   : > { %3863 = vmatpush3.bf16.msra.mxu0 %v4169_v42  ;;  %v2232_v40 = vpop.f32.mrb[44].mxu0 }
 0x26d   : > { %v4856_v48 = vpack.c.bf16 %v2267_v46, %v2266_v45  ;;  %v2245_v49 = vadd.f32 %v2232_v40, %v2039_v61  ;;  %v2234_v41 = vpop.f32.mrb[45].mxu0  ;;  %3864 = vmatprep.subr.bf16.mxu0 %v4238_v35  ;;  %v4176_v61 = vld [vmem:[%s5067_s5 + $0x30] sm:$0xff]  }
 0x26e   : > { %3807 = vmatpush3.bf16.msra.mxu1 %v4170_v44  ;;  %v2235_v50 = vpop.f32.mrb[46].mxu0 }
 0x26f   : > { %v2260_v52 = vadd.f32 %v4813_v4, %v2245_v49  ;;  %v2246_v53 = vadd.f32 %v2235_v50, %v4808_v1  ;;  %v2237_v54 = vpop.f32.mrb[47].mxu0  ;;  %3808 = vmatprep.subr.bf16.mxu1 %v4238_v35  ;;  %v4180_v1 = vld [vmem:[%s5067_s5 + $0xc0] sm:$0xff]   ;;  %v2825_v28 = vrot.slane %v4856_v48, 4 }
 0x270   : > { %3865 = vmatpush3.bf16.msra.mxu0 %v4171_v47 }
 0x271   : > { %v2261_v56 = vadd.f32 %v4813_v4, %v2246_v53  ;;  %3866 = vmatprep.subr.bf16.mxu0 %v4238_v35  ;;  %v2268_v57 = vmax.f32 %v2260_v52, 0.0  ;;  %v4183_v4 = vld [vmem:[%s5067_s5 + $0x180] sm:$0xff]  }
 0x272   : > { %3809 = vmatpush3.bf16.msra.mxu1 %v4172_v51 }
 0x273   : > { %v2269_v58 = vmax.f32 %v2261_v56, 0.0  ;;  %3810 = vmatprep.subr.bf16.mxu1 %v4238_v35 }
 0x274   : > { %3867 = vmatpush3.bf16.msra.mxu0 %v4173_v55 }
 0x275   : > { %v4877_v60 = vpack.c.bf16 %v2269_v58, %v2268_v57  ;;  %3868 = vmatprep.subr.bf16.mxu0 %v4238_v35 }
 0x276   : > { %3811 = vmatpush3.bf16.msra.mxu1 %v4174_v30 }
 0x277   : > { %3812 = vmatprep.subr.bf16.mxu1 %v4238_v35  ;;  %v3040_v38 = vrot.slane %v4877_v60, 4 }
 0x278   : > { %3869 = vmatpush3.bf16.msra.mxu0 %v4175_v59 }
 0x279   : > { %3870 = vmatprep.subr.bf16.mxu0 %v4238_v35 }
 0x27a   : > { %3813 = vmatpush3.bf16.msra.mxu1 %v4176_v61 }
 0x27b   : > { %3814 = vmatprep.subr.bf16.mxu1 %v4238_v35 }
 0x27c   : > { %3871 = vmatpush3.bf16.msra.mxu0 %v4177_v62 }
 0x27d   : > { %3872 = vmatprep.subr.bf16.mxu0 %v4238_v35 }
 0x27e   : > { %3815 = vmatpush3.bf16.msra.mxu1 %v4178_v63 }
 0x27f   : > { %3840 = vmatprep.subr.bf16.mxu1 %v4238_v35 }
 0x280   : > { %3873 = vmatpush3.bf16.msra.mxu0 %v4179_v0 }
 0x281   : > { %3817 = vmatmul.mubr.bf16.vlgmr.msra.gmra.mrb[36].mxu1 %v4817_v14  ;;  %3874 = vmatprep.subr.bf16.mxu0 %v4238_v35  ;;  %v4194_v14 = vld [vmem:[%s5067_s5 + $0xf8] sm:$0xff]  }
 0x282   : > { %3841 = vmatpush3.bf16.msra.mxu1 %v4180_v1  ;;  %3856 = vmatprep.mubr.msk.bf16.mxu1 %vm4239_vm5, %v4238_v35 }
 0x283   : > { %3842 = vmatprep.subr.bf16.mxu1 %v4238_v35 }
 0x284   : > { %3875 = vmatpush3.bf16.msra.mxu0 %v4181_v2 }
 0x285   : > { %3900 = vmatprep.subr.bf16.mxu0 %v4238_v35 }
 0x286   : > { %3843 = vmatpush3.bf16.msra.mxu1 %v4182_v3 }
 0x287   : > { %3877 = vmatmul.mubr.bf16.vlgmr.msra.gmra.mrb[52].mxu0 %v4856_v48  ;;  %3844 = vmatprep.subr.bf16.mxu1 %v4238_v35 }
 0x288   : > { %3901 = vmatpush3.bf16.msra.mxu0 %v4183_v4  ;;  %3916 = vmatprep.mubr.msk.bf16.mxu0 %vm4239_vm5, %v4238_v35 }
 0x289   : > { %3902 = vmatprep.subr.bf16.mxu0 %v4238_v35 }
 0x28a   : > { %3845 = vmatpush3.bf16.msra.mxu1 %v4184_v5 }
 0x28b   : > { %3846 = vmatprep.subr.bf16.mxu1 %v4238_v35 }
 0x28c   : > { %3903 = vmatpush3.bf16.msra.mxu0 %v4185_v6 }
 0x28d   : > { %3904 = vmatprep.subr.bf16.mxu0 %v4238_v35 }
 0x28e   : > { %3847 = vmatpush3.bf16.msra.mxu1 %v4186_v7 }
 0x28f   : > { %3848 = vmatprep.subr.bf16.mxu1 %v4238_v35 }
 0x290   : > { %3905 = vmatpush3.bf16.msra.mxu0 %v4187_v10  ;;  %v3689_v10 = vld [vmem:[%s5068_s6] ss:$0 sm:$0xff] }
 0x291   : > { %3906 = vmatprep.subr.bf16.mxu0 %v4238_v35 }
 0x292   : > { %3849 = vmatpush3.bf16.msra.mxu1 %v4188_v20 }
 0x293   : > { %3850 = vmatprep.subr.bf16.mxu1 %v4238_v35 }
 0x294   : > { %3907 = vmatpush3.bf16.msra.mxu0 %v4189_v8 }
 0x295   : > { %3908 = vmatprep.subr.bf16.mxu0 %v4238_v35 }
 0x296   : > { %3851 = vmatpush3.bf16.msra.mxu1 %v4190_v9 }
 0x297   : > { %3852 = vmatprep.subr.bf16.mxu1 %v4238_v35 }
 0x298   : > { %3909 = vmatpush3.bf16.msra.mxu0 %v4191_v11 }
 0x299   : > { %3910 = vmatprep.subr.bf16.mxu0 %v4238_v35 }
 0x29a   : > { %3853 = vmatpush3.bf16.msra.mxu1 %v4192_v12 }
 0x29b   : > { %3854 = vmatprep.subr.bf16.mxu1 %v4238_v35 }
 0x29c   : > { %3911 = vmatpush3.bf16.msra.mxu0 %v4193_v13 }
 0x29d   : > { %3912 = vmatprep.subr.bf16.mxu0 %v4238_v35 }
 0x29e   : > { %3855 = vmatpush3.bf16.msra.mxu1 %v4194_v14 }
 0x29f   : > { %3880 = vmatprep.subr.bf16.mxu1 %v4238_v35 }
 0x2a0   : > { %3913 = vmatpush3.bf16.msra.mxu0 %v4195_v15 }
 0x2a1   : > { %3857 = vmatmul.mubr.bf16.vlgmr.msra.gmra.mrb[40].mxu1 %v2610_v17  ;;  %3914 = vmatprep.subr.bf16.mxu0 %v4238_v35 }
 0x2a2   : > { %3881 = vmatpush3.bf16.msra.mxu1 %v4196_v16  ;;  %3896 = vmatprep.mubr.msk.bf16.mxu1 %vm4239_vm5, %v4238_v35 }
 0x2a3   : > { %3882 = vmatprep.subr.bf16.mxu1 %v4238_v35 }
 0x2a4   : > { %3915 = vmatpush3.bf16.msra.mxu0 %v4197_v18 }
 0x2a6   : > { %3883 = vmatpush3.bf16.msra.mxu1 %v4198_v19 }
 0x2a7   : > { %3917 = vmatmul.mubr.bf16.vlgmr.msra.gmra.mrb[56].mxu0 %v4877_v60  ;;  %3884 = vmatprep.subr.bf16.mxu1 %v4238_v35 }
 0x2aa   : > { %3885 = vmatpush3.bf16.msra.mxu1 %v4199_v21 }
 0x2ab   : > { %3886 = vmatprep.subr.bf16.mxu1 %v4238_v35 }
 0x2ae   : > { %3887 = vmatpush3.bf16.msra.mxu1 %v4200_v22 }
 0x2af   : > { %3888 = vmatprep.subr.bf16.mxu1 %v4238_v35 }
 0x2b2   : > { %3889 = vmatpush3.bf16.msra.mxu1 %v4201_v23 }
 0x2b3   : > { %3890 = vmatprep.subr.bf16.mxu1 %v4238_v35 }
 0x2b6   : > { %3891 = vmatpush3.bf16.msra.mxu1 %v4202_v24 }
 0x2b7   : > { %3892 = vmatprep.subr.bf16.mxu1 %v4238_v35 }
 0x2ba   : > { %3893 = vmatpush3.bf16.msra.mxu1 %v4203_v25 }
 0x2bb   : > { %3894 = vmatprep.subr.bf16.mxu1 %v4238_v35 }
 0x2be   : > { %3895 = vmatpush3.bf16.msra.mxu1 %v4204_v26 }
 0x2bf   : > { %3920 = vmatprep.subr.bf16.mxu1 %v4238_v35 }
 0x2c1   : > { %3897 = vmatmul.mubr.bf16.vlgmr.msra.gmra.mrb[44].mxu1 %v2825_v28 }
 0x2c2   : > { %3921 = vmatpush3.bf16.msra.mxu1 %v4205_v27  ;;  %3936 = vmatprep.mubr.msk.bf16.mxu1 %vm4239_vm5, %v4238_v35 }
 0x2c3   : > { %3922 = vmatprep.subr.bf16.mxu1 %v4238_v35 }
 0x2c6   : > { %3923 = vmatpush3.bf16.msra.mxu1 %v4206_v29 }
 0x2c7   : > { %3924 = vmatprep.subr.bf16.mxu1 %v4238_v35 }
 0x2ca   : > { %3925 = vmatpush3.bf16.msra.mxu1 %v4207_v31 }
 0x2cb   : > { %3926 = vmatprep.subr.bf16.mxu1 %v4238_v35 }
 0x2ce   : > { %3927 = vmatpush3.bf16.msra.mxu1 %v4208_v32 }
 0x2cf   : > { %3928 = vmatprep.subr.bf16.mxu1 %v4238_v35 }
 0x2d2   : > { %3929 = vmatpush3.bf16.msra.mxu1 %v4209_v33 }
 0x2d3   : > { %3930 = vmatprep.subr.bf16.mxu1 %v4238_v35 }
 0x2d6   : > { %3931 = vmatpush3.bf16.msra.mxu1 %v4210_v34 }
 0x2d7   : > { %3932 = vmatprep.subr.bf16.mxu1 %v4238_v35 }
 0x2da   : > { %3933 = vmatpush3.bf16.msra.mxu1 %v4211_v36 }
 0x2db   : > { %3934 = vmatprep.subr.bf16.mxu1 %v4238_v35 }
 0x2de   : > { %3935 = vmatpush3.bf16.msra.mxu1 %v4212_v37 }
 0x2e1   : > { %3937 = vmatmul.mubr.bf16.vlgmr.msra.gmra.mrb[48].mxu1 %v3040_v38 }
 0x334   : > { %v2392_v39 = vpop.f32.mrb[32].mxu1 }
 0x335   : > { %v3798_v42 = vpop.f32.mrb[33].mxu1 }
 0x336   : > { %v2395_v43 = vpop.f32.mrb[34].mxu1 }
 0x337   : > { %v3799_v44 = vpop.f32.mrb[35].mxu1 }
 0x33a   : > { %v2585_v45 = vpop.f32.mrb[48].mxu0 }
 0x33b   : > { %v3838_v46 = vpop.f32.mrb[49].mxu0 }
 0x33c   : > { %v2588_v40 = vpop.f32.mrb[50].mxu0 }
 0x33d   : > { %v3839_v47 = vpop.f32.mrb[51].mxu0 }
 0x354   : > { %v2480_v48 = vpop.f32.mrb[36].mxu1 }
 0x355   : > { %v2481_v49 = vadd.f32 %v2480_v48, %v2392_v39  ;;  %v3818_v41 = vpop.f32.mrb[37].mxu1 }
 0x356   : > { %v2483_v50 = vpop.f32.mrb[38].mxu1 }
 0x357   : > { %v3819_v51 = vpop.f32.mrb[39].mxu1  ;;  %v2591_v52 = vadd.f32 %v2585_v45, %v2481_v49 }
 0x35a   : > { %v2800_v53 = vpop.f32.mrb[52].mxu0 }
 0x35b   : > { %v3878_v35 = vpop.f32.mrb[53].mxu0 }
 0x35c   : > { %v2803_v54 = vpop.f32.mrb[54].mxu0 }
 0x35d   : > { %v3879_v55 = vpop.f32.mrb[55].mxu0 }
 0x374   : > { %v2694_v56 = vpop.f32.mrb[40].mxu1 }
 0x375   : > { %v2700_v30 = vadd.f32 %v2694_v56, %v2591_v52  ;;  %v3858_v57 = vpop.f32.mrb[41].mxu1 }
 0x376   : > { %v2697_v58 = vpop.f32.mrb[42].mxu1 }
 0x377   : > { %v3859_v59 = vpop.f32.mrb[43].mxu1  ;;  %v2806_v60 = vadd.f32 %v2800_v53, %v2700_v30 }
 0x37a   : > { %v3015_v61 = vpop.f32.mrb[56].mxu0 }
 0x37b   : > { %v3918_v62 = vpop.f32.mrb[57].mxu0 }
 0x37c   : > { %v3018_v63 = vpop.f32.mrb[58].mxu0 }
 0x37d   : > { %v3919_v0 = vpop.f32.mrb[59].mxu0 }
 0x394   : > { %v2909_v1 = vpop.f32.mrb[44].mxu1 }
 0x395   : > { %v2915_v2 = vadd.f32 %v2909_v1, %v2806_v60  ;;  %v3898_v3 = vpop.f32.mrb[45].mxu1 }
 0x396   : > { %v2912_v4 = vpop.f32.mrb[46].mxu1 }
 0x397   : > { %v3899_v5 = vpop.f32.mrb[47].mxu1  ;;  %v3021_v6 = vadd.f32 %v3015_v61, %v2915_v2 }
 0x3b4   : > { %v3124_v7 = vpop.f32.mrb[48].mxu1 }
 0x3b5   : > { %v3130_v20 = vadd.f32 %v3124_v7, %v3021_v6  ;;  %v3938_v8 = vpop.f32.mrb[49].mxu1 }
 0x3b6   : > { %v3127_v9 = vpop.f32.mrb[50].mxu1 }
 0x3b7   : > { %v3138_v11 = vadd.f32 %v3689_v10, %v3130_v20  ;;  %v3939_v12 = vpop.f32.mrb[51].mxu1 }
 0x3b9   : > { %3140 = vst.msk [vmem:[%s385_s15] sm:$0xff] %vm3139_vm6, %v3138_v11 }
 0x3ba PF: > { %p14_p9 = scmp.ge.s32.totalorder %s4297_s28, 4   ;;  %s5072_s24 = smov %s4231_s25 }
 0x3bb   : > { %s5073_s25 = smov %s4306_s8  ;;  %s5074_s26 = smov %s4297_s28 }
 0x3bc   :  { %16 = sbr.rel (!%p14_p9) target bundleno = 2 (0x2), region = 140 }

</bundles_post_ra>
